<compile_context>
chip_gen: v6e
topology: v6e:2x2x1
jax: 0.10.0
libtpu: 0.0.40
codegen_flags: <defaults>
</compile_context>

<pallas_src>
import jax
import jax.numpy as jnp
from jax.experimental import pallas as pl
from jax.experimental.pallas import tpu as pltpu

# Logical MLPNet dims (PyTorch: 784 -> 500 -> 256 -> 10).
D_IN = 28 * 28
D_H1 = 500
D_H2 = 256
D_OUT = 10

# MXU / lane-friendly padded dims (lane axes are multiples of 128).
D_H1_PAD = 512
D_H2_PAD = 256
D_OUT_PAD = 128

# Max batch tile. With bf16 x / bf16 out, TB=2048 keeps live VMEM ~16 MiB:
# fine on v5e/v6e (128 MiB) and within v7x's 64 MiB physical VMEM.
TB_MAX = 2048


def _round_up(x, m):
    return (x + m - 1) // m * m


def mlp_kernel(x_ref, w1_ref, b1_ref, w2_ref, b2_ref, w3_ref, b3_ref, out_ref):
    # x arrives as bf16; matmuls accumulate f32; bias-add / ReLU on the VPU in
    # f32; hidden activations re-cast to bf16 only at the next MXU input.
    x = x_ref[...]
    h1 = jnp.dot(x, w1_ref[...], preferred_element_type=jnp.float32) + b1_ref[...]
    h1 = jnp.maximum(h1, 0.0).astype(jnp.bfloat16)
    h2 = jnp.dot(h1, w2_ref[...], preferred_element_type=jnp.float32) + b2_ref[...]
    h2 = jnp.maximum(h2, 0.0).astype(jnp.bfloat16)
    out = jnp.dot(h2, w3_ref[...], preferred_element_type=jnp.float32) + b3_ref[...]
    out_ref[...] = out.astype(out_ref.dtype)  # bf16, lane-dense 128-wide store


def mlp_forward(x_nchw, padded_params):
    """x_nchw: (B, 1, 28, 28) float32 (or bf16). Returns logits (B, 10) f32."""
    w1, b1, w2, b2, w3, b3 = padded_params
    b = x_nchw.shape[0]
    x = x_nchw.reshape(-1, D_IN)  # x.view(-1, 784)
    if x.dtype != jnp.bfloat16:
        # Kernel-side interface is bf16 to halve the dominant activation HBM
        # stream. Ideally the upstream producer emits bf16/u8 directly so this
        # cast never materializes as a separate HBM pass.
        x = x.astype(jnp.bfloat16)

    # Batch-tile selection:
    #   * >= 2 tiles so the "parallel" batch axis occupies both v7x TCs,
    #   * balanced tiles (minimal padding; <16 wasted rows per tile),
    #   * multiple of 16 for bf16 sublane packing.
    n_tiles = max(2, pl.cdiv(b, TB_MAX))
    tb = _round_up(pl.cdiv(max(b, 1), n_tiles), 16)
    b_pad = n_tiles * tb
    if b_pad != b:
        x = jnp.pad(x, ((0, b_pad - b), (0, 0)))
    grid = (n_tiles,)

    # Constant index_map -> Pallas skips the re-DMA; weights stay VMEM-resident
    # (~1.1 MiB bf16) across all batch tiles.
    const = lambda i: (0, 0)
    weight_specs = [
        pl.BlockSpec((D_IN, D_H1_PAD), const),
        pl.BlockSpec((1, D_H1_PAD), const),
        pl.BlockSpec((D_H1_PAD, D_H2_PAD), const),
        pl.BlockSpec((1, D_H2_PAD), const),
        pl.BlockSpec((D_H2_PAD, D_OUT_PAD), const),
        pl.BlockSpec((1, D_OUT_PAD), const),
    ]

    flops = 2 * b_pad * (D_IN * D_H1_PAD + D_H1_PAD * D_H2_PAD + D_H2_PAD * D_OUT_PAD)
    w_bytes = 2 * (D_IN * D_H1_PAD + D_H1_PAD * D_H2_PAD + D_H2_PAD * D_OUT_PAD)
    bias_bytes = 4 * (D_H1_PAD + D_H2_PAD + D_OUT_PAD)
    io_bytes = 2 * b_pad * (D_IN + D_OUT_PAD)  # bf16 in + bf16 out
    cost = pl.CostEstimate(
        flops=flops, transcendentals=0,
        bytes_accessed=w_bytes + bias_bytes + io_bytes)

    out = pl.pallas_call(
        mlp_kernel,
        out_shape=jax.ShapeDtypeStruct((b_pad, D_OUT_PAD), jnp.bfloat16),
        grid=grid,
        in_specs=[pl.BlockSpec((tb, D_IN), lambda i: (i, 0))] + weight_specs,
        out_specs=pl.BlockSpec((tb, D_OUT_PAD), lambda i: (i, 0)),
        compiler_params=pltpu.CompilerParams(
            # Batch axis is embarrassingly parallel -> shard across v7x's 2 TCs.
            dimension_semantics=("parallel",),
            # Headroom for TB=2048 tiles; still < v7x's 64 MiB physical VMEM.
            vmem_limit_bytes=48 * 1024 * 1024),
        cost_estimate=cost,
    )(x, w1, b1, w2, b2, w3, b3)

    return out[:b, :D_OUT].astype(jnp.float32)


def init_params(key):
    """Logical (unpadded) params matching PyTorch nn.Linear init.
    PyTorch stores W as (out, in); we store transposed (in, out) for x @ W."""
    dims = [(D_IN, D_H1), (D_H1, D_H2), (D_H2, D_OUT)]
    params = []
    for fan_in, fan_out in dims:
        key, kw, kb = jax.random.split(key, 3)
        bound = 1.0 / jnp.sqrt(fan_in)  # PyTorch default uniform bound
        w = jax.random.uniform(kw, (fan_in, fan_out), jnp.float32, -bound, bound)
        bias = jax.random.uniform(kb, (1, fan_out), jnp.float32, -bound, bound)
        params += [w, bias]
    return tuple(params)


def prepare_params(params):
    """Zero-pad to MXU-friendly shapes; weights -> bf16, biases stay f32.
    Zero-padded rows/cols keep padded hidden/logit lanes at exactly 0."""
    w1, b1, w2, b2, w3, b3 = params
    w1p = jnp.zeros((D_IN, D_H1_PAD), jnp.bfloat16).at[:, :D_H1].set(
        w1.astype(jnp.bfloat16))
    b1p = jnp.zeros((1, D_H1_PAD), jnp.float32).at[:, :D_H1].set(b1)
    w2p = jnp.zeros((D_H1_PAD, D_H2_PAD), jnp.bfloat16).at[:D_H1, :D_H2].set(
        w2.astype(jnp.bfloat16))
    b2p = jnp.zeros((1, D_H2_PAD), jnp.float32).at[:, :D_H2].set(b2)
    w3p = jnp.zeros((D_H2_PAD, D_OUT_PAD), jnp.bfloat16).at[:D_H2, :D_OUT].set(
        w3.astype(jnp.bfloat16))
    b3p = jnp.zeros((1, D_OUT_PAD), jnp.float32).at[:, :D_OUT].set(b3)
    return (w1p, b1p, w2p, b2p, w3p, b3p)


if __name__ == "__main__":
    key = jax.random.PRNGKey(0)
    kx, kp = jax.random.split(key)

    batch = 8
    x = jax.random.normal(kx, (batch, 1, 28, 28), jnp.float32)
    params = init_params(kp)
    padded_params = prepare_params(params)

    logits = mlp_forward(x, padded_params)
    jax.block_until_ready(logits)

    # Reference mirroring the kernel precision (bf16 MXU inputs, f32 accumulate,
    # bf16 output writeback is the only extra rounding in the kernel path).
    w1, b1, w2, b2, w3, b3 = params
    xf = x.reshape(-1, D_IN)

    def bf16_dot(a, w):
        return jnp.dot(a.astype(jnp.bfloat16), w.astype(jnp.bfloat16),
                       preferred_element_type=jnp.float32)

    ref = jnp.maximum(bf16_dot(xf, w1) + b1, 0.0)
    ref = jnp.maximum(bf16_dot(ref, w2) + b2, 0.0)
    ref = bf16_dot(ref, w3) + b3

    assert logits.shape == (batch, D_OUT)
    assert jnp.allclose(logits, ref, atol=2e-2, rtol=2e-2), \
        float(jnp.max(jnp.abs(logits - ref)))

    print("KERNEL_OK")
</pallas_src>

<mosaic_0001>
module attributes {stable_mosaic.version = 11 : i64} {
  func.func @mlp_kernel(%arg0: i32, %arg1: memref<16x784xbf16, #tpu.memory_space<vmem>>, %arg2: memref<784x512xbf16, #tpu.memory_space<vmem>>, %arg3: memref<1x512xf32, #tpu.memory_space<vmem>>, %arg4: memref<512x256xbf16, #tpu.memory_space<vmem>>, %arg5: memref<1x256xf32, #tpu.memory_space<vmem>>, %arg6: memref<256x128xbf16, #tpu.memory_space<vmem>>, %arg7: memref<1x128xf32, #tpu.memory_space<vmem>>, %arg8: memref<16x128xbf16, #tpu.memory_space<vmem>>) attributes {dimension_semantics = [#tpu.dimension_semantics<parallel>], iteration_bounds = array<i64: 2>, scalar_prefetch = 0 : i64, scratch_operands = 0 : i64, tpu.core_type = #tpu.core_type<tc>, window_params = [{transform_indices = @transform_0, window_bounds = array<i64: 16, 784>}, {pipeline_mode = #tpu.pipeline_mode<synchronous>, transform_indices = @transform_1, window_bounds = array<i64: 784, 512>}, {pipeline_mode = #tpu.pipeline_mode<synchronous>, transform_indices = @transform_2, window_bounds = array<i64: 1, 512>}, {pipeline_mode = #tpu.pipeline_mode<synchronous>, transform_indices = @transform_3, window_bounds = array<i64: 512, 256>}, {pipeline_mode = #tpu.pipeline_mode<synchronous>, transform_indices = @transform_4, window_bounds = array<i64: 1, 256>}, {pipeline_mode = #tpu.pipeline_mode<synchronous>, transform_indices = @transform_5, window_bounds = array<i64: 256, 128>}, {pipeline_mode = #tpu.pipeline_mode<synchronous>, transform_indices = @transform_6, window_bounds = array<i64: 1, 128>}, {transform_indices = @transform_7, window_bounds = array<i64: 16, 128>}]} {
    %c0 = arith.constant 0 : index
    %c0_0 = arith.constant 0 : index
    %0 = vector.load %arg1[%c0, %c0_0] : memref<16x784xbf16, #tpu.memory_space<vmem>>, vector<16x784xbf16>
    %c0_1 = arith.constant 0 : index
    %c0_2 = arith.constant 0 : index
    %1 = vector.load %arg2[%c0_1, %c0_2] : memref<784x512xbf16, #tpu.memory_space<vmem>>, vector<784x512xbf16>
    %cst = arith.constant dense<0.000000e+00> : vector<16x512xf32>
    %2 = tpu.matmul %0, %1, %cst {dimension_numbers = #tpu.dot_dimension_numbers<[1], [0], [0], [1], [0, 0, 1, 1], [], []>} : vector<16x784xbf16>, vector<784x512xbf16>, vector<16x512xf32> -> vector<16x512xf32>
    %c0_3 = arith.constant 0 : index
    %c0_4 = arith.constant 0 : index
    %3 = vector.load %arg3[%c0_3, %c0_4] : memref<1x512xf32, #tpu.memory_space<vmem>>, vector<1x512xf32>
    %4 = vector.broadcast %3 : vector<1x512xf32> to vector<16x512xf32>
    %5 = arith.addf %2, %4 : vector<16x512xf32>
    %cst_5 = arith.constant 0.000000e+00 : f32
    %6 = vector.broadcast %cst_5 : f32 to vector<16x512xf32>
    %7 = arith.maximumf %5, %6 : vector<16x512xf32>
    %8 = arith.truncf %7 : vector<16x512xf32> to vector<16x512xbf16>
    %c0_6 = arith.constant 0 : index
    %c0_7 = arith.constant 0 : index
    %9 = vector.load %arg4[%c0_6, %c0_7] : memref<512x256xbf16, #tpu.memory_space<vmem>>, vector<512x256xbf16>
    %cst_8 = arith.constant dense<0.000000e+00> : vector<16x256xf32>
    %10 = tpu.matmul %8, %9, %cst_8 {dimension_numbers = #tpu.dot_dimension_numbers<[1], [0], [0], [1], [0, 0, 1, 1], [], []>} : vector<16x512xbf16>, vector<512x256xbf16>, vector<16x256xf32> -> vector<16x256xf32>
    %c0_9 = arith.constant 0 : index
    %c0_10 = arith.constant 0 : index
    %11 = vector.load %arg5[%c0_9, %c0_10] : memref<1x256xf32, #tpu.memory_space<vmem>>, vector<1x256xf32>
    %12 = vector.broadcast %11 : vector<1x256xf32> to vector<16x256xf32>
    %13 = arith.addf %10, %12 : vector<16x256xf32>
    %cst_11 = arith.constant 0.000000e+00 : f32
    %14 = vector.broadcast %cst_11 : f32 to vector<16x256xf32>
    %15 = arith.maximumf %13, %14 : vector<16x256xf32>
    %16 = arith.truncf %15 : vector<16x256xf32> to vector<16x256xbf16>
    %c0_12 = arith.constant 0 : index
    %c0_13 = arith.constant 0 : index
    %17 = vector.load %arg6[%c0_12, %c0_13] : memref<256x128xbf16, #tpu.memory_space<vmem>>, vector<256x128xbf16>
    %cst_14 = arith.constant dense<0.000000e+00> : vector<16x128xf32>
    %18 = tpu.matmul %16, %17, %cst_14 {dimension_numbers = #tpu.dot_dimension_numbers<[1], [0], [0], [1], [0, 0, 1, 1], [], []>} : vector<16x256xbf16>, vector<256x128xbf16>, vector<16x128xf32> -> vector<16x128xf32>
    %c0_15 = arith.constant 0 : index
    %c0_16 = arith.constant 0 : index
    %19 = vector.load %arg7[%c0_15, %c0_16] : memref<1x128xf32, #tpu.memory_space<vmem>>, vector<1x128xf32>
    %20 = vector.broadcast %19 : vector<1x128xf32> to vector<16x128xf32>
    %21 = arith.addf %18, %20 : vector<16x128xf32>
    %22 = arith.truncf %21 : vector<16x128xf32> to vector<16x128xbf16>
    %c0_17 = arith.constant 0 : index
    %c0_18 = arith.constant 0 : index
    %23 = vector.load %arg8[%c0_17, %c0_18] : memref<16x128xbf16, #tpu.memory_space<vmem>>, vector<16x128xbf16>
    tpu.vector_store %arg8[%c0_17, %c0_18], %22 {strides = array<i32>} : memref<16x128xbf16, #tpu.memory_space<vmem>>, vector<16x128xbf16>,
    return
  }
  func.func @transform_0(%arg0: i32) -> (i32, i32) {
    %c0_i32 = arith.constant 0 : i32
    %c0_i32_0 = arith.constant 0 : i32
    return %arg0, %c0_i32 : i32, i32
  }
  func.func @transform_1(%arg0: i32) -> (i32, i32) {
    %c0_i32 = arith.constant 0 : i32
    %c0_i32_0 = arith.constant 0 : i32
    %c0_i32_1 = arith.constant 0 : i32
    return %c0_i32, %c0_i32_0 : i32, i32
  }
  func.func @transform_2(%arg0: i32) -> (i32, i32) {
    %c0_i32 = arith.constant 0 : i32
    %c0_i32_0 = arith.constant 0 : i32
    %c0_i32_1 = arith.constant 0 : i32
    return %c0_i32, %c0_i32_0 : i32, i32
  }
  func.func @transform_3(%arg0: i32) -> (i32, i32) {
    %c0_i32 = arith.constant 0 : i32
    %c0_i32_0 = arith.constant 0 : i32
    %c0_i32_1 = arith.constant 0 : i32
    return %c0_i32, %c0_i32_0 : i32, i32
  }
  func.func @transform_4(%arg0: i32) -> (i32, i32) {
    %c0_i32 = arith.constant 0 : i32
    %c0_i32_0 = arith.constant 0 : i32
    %c0_i32_1 = arith.constant 0 : i32
    return %c0_i32, %c0_i32_0 : i32, i32
  }
  func.func @transform_5(%arg0: i32) -> (i32, i32) {
    %c0_i32 = arith.constant 0 : i32
    %c0_i32_0 = arith.constant 0 : i32
    %c0_i32_1 = arith.constant 0 : i32
    return %c0_i32, %c0_i32_0 : i32, i32
  }
  func.func @transform_6(%arg0: i32) -> (i32, i32) {
    %c0_i32 = arith.constant 0 : i32
    %c0_i32_0 = arith.constant 0 : i32
    %c0_i32_1 = arith.constant 0 : i32
    return %c0_i32, %c0_i32_0 : i32, i32
  }
  func.func @transform_7(%arg0: i32) -> (i32, i32) {
    %c0_i32 = arith.constant 0 : i32
    %c0_i32_0 = arith.constant 0 : i32
    return %arg0, %c0_i32 : i32, i32
  }
}

</mosaic_0001>

<bundles_post_ra>
// kernel: tpu_custom_call.1
= control target key start
LH: loop header
LB: loop body
LE: loop exit
PB: predicated region body
PF: predicated region fallthrough
CT: control target
= control target key end

     0   :  { %s4146_s0 = inlined_call_operand.hbm [shape: bf16[32,784], index: 0, kind: input, shape index: {}]   ;;  %s4147_s1 = inlined_call_operand.hbm [shape: bf16[784,512], index: 1, kind: input, shape index: {}]   ;;  %s4148_s2 = inlined_call_operand.hbm [shape: f32[1,512], index: 2, kind: input, shape index: {}]   ;;  %s4149_s3 = inlined_call_operand.hbm [shape: bf16[512,256], index: 3, kind: input, shape index: {}]   ;;  %s4150_s4 = inlined_call_operand.vmem [shape: f32[1,256], index: 4, kind: input, shape index: {}]   ;;  %s4151_s5 = inlined_call_operand.hbm [shape: bf16[256,128], index: 5, kind: input, shape index: {}]   ;;  %s4152_s6 = inlined_call_operand.vmem [shape: f32[1,128], index: 6, kind: input, shape index: {}]   ;;  %s4153_s7 = inlined_call_operand.hbm [shape: bf16[32,128], index: 7, kind: output, shape index: {}]  }
   0x1   :  { %4158 = sst [smem:[#allocation16_spill]] %s4147_s1 }
   0x2   :  { %12 = vsyncpa [#allocation3], 0 }
   0x3   :  { %14 = vsyncpa [#allocation3 + $0x1], 0 }
   0x4   :  { %15 = vsyncpa [#allocation6], 0 }
   0x5   :  { %16 = vsyncpa [#allocation9], 0 }
   0x6   :  { %17 = vsyncpa [#allocation4], 0 }
   0x7   :  { %19 = vsyncpa [#allocation4 + $0x1], 0  ;;  %s3876_s24 = smov 0   ;;  %s3878_s25 = smov 0  }
   0x8   :  { %s3880_s26 = smov 0   ;;  %s3882_s27 = smov 0  }
   0x9 LB: > { %s3897_s28 = sadd.s32 4294967295, %s3817_s27   ;;  %s2757_s29 = sadd.s32 4294967294, %s3817_s27   ;;  %s3817_s27 = sphi %s3882_s27, %s4179_s27   ;;  %s3813_s26 = sphi %s3880_s26, %s4178_s26   ;;  %s3809_s25 = sphi %s3878_s25, %s4177_s25   ;;  %s3805_s24 = sphi %s3876_s24, %s4176_s24  }
   0xa   : > { %p45_p0 = scmp.ne.s32.totalorder %s3809_s25, %s3805_s24  ;;  %p4154_p1 = scmp.eq.s32.totalorder %s3897_s28, 0 }
   0xb   : > { %p201_p3 = scmp.eq.s32.totalorder %s2757_s29, 1  ;;  %p2758_p5 = scmp.ge.s32.totalorder %s3817_s27, 1 }
   0xc   : > { %p3906_p4 = por %p4154_p1, %p45_p0  ;;  %p208_p7 = scmp.lt.s32.totalorder %s3817_s27, 3 }
   0xd   : > { %p3911_p6 = por %p201_p3, %p45_p0  ;;  %s3819_s10 = smov [#allocation5]  }
   0xe   : > { %s4159_s30 = scalar_select %p3906_p4, 1, 0 }
   0xf   : > { %s4160_s8 = scalar_select %p3911_p6, 1, 0 }
  0x10   : > { %p3916_p8 = pnand %p2758_p5, %p208_p7  ;;  %s220_s11 = sshll.u32 %s3819_s10, 4  ;;  %s221_s11 = int_to_ptr.vmem [resolvable:$true] %s220_s11 }
  0x11   : > { %s3820_s13 = smov [#allocation8]   ;;  %s3624_s15 = scalar_lea.vmem %s221_s11, 25088 }
  0x12   : > { %s4161_s9 = scalar_select %p3916_p8, 1, 0 }
  0x13   : > { %p3119_p9 = pneg %p3916_p8  ;;  %s244_s14 = sshll.u32 %s3820_s13, 4  ;;  %s245_s14 = int_to_ptr.vmem [resolvable:$true] %s244_s14 }
  0x14   : > { %p3625_p13 = scmp.ne.s32.totalorder %s221_s11, %s3624_s15  ;;  %p3632_p5 = scmp.lt.s32.totalorder %s221_s11, %s221_s11 }
  0x15   : > { %p3925_p11 = pnand %p3119_p9, %p4154_p1  ;;  %p3633_p7 = scmp.lt.s32.totalorder %s3624_s15, %s3624_s15 }
  0x17   : > { %p3615_p12 = pneg %p3925_p11  ;;  %p3634_p10 = por %p3633_p7, %p3632_p5 }
  0x19   : > { %p3627_p0 = pnand %p3625_p13, %p3615_p12 }
  0x1b   : > { %p3628_p3 = pneg %p3627_p0 }
  0x1d   : > { %p3635_p9 = pnand %p3634_p10, %p3628_p3 }
  0x1f   : > { %3638 = shalt.err (!%p3635_p9)
}
  0x20   : > { %s3821_s16 = smov 256   ;;  %s3822_s17 = smov 16  }
  0x21   : > { %s4163_s1 = sld [smem:[#allocation16_spill]]  ;;  %s3650_s20 = scalar_lea.vmem %s245_s14, 8192 }
  0x22   : > { %p3651_p1 = scmp.ne.s32.totalorder %s245_s14, %s3650_s20  ;;  %p3658_p2 = scmp.lt.s32.totalorder %s245_s14, %s245_s14 }
  0x23   : > { %p3659_p6 = scmp.lt.s32.totalorder %s3650_s20, %s3650_s20 }
  0x24   : > { %p3653_p13 = pnand %p3651_p1, %p3615_p12 }
  0x25   : > { %p3660_p5 = por %p3659_p6, %p3658_p2 }
  0x26   : > { %p3654_p0 = pneg %p3653_p13 }
  0x27   : > { %3122 = dma.hbm_to_vmem [thread:$0]  (!%p3925_p11), %s4163_s1, 25088, %s221_s11, [#allocation6], %s3821_s16, %s3821_s16, %s3822_s17  }
  0x28   : > { %p3661_p10 = pnand %p3660_p5, %p3654_p0 }
  0x2a   : > { %3664 = shalt.err (!%p3661_p10)
}
  0x2b   : > { %s3823_s21 = smov 128   ;;  %s3824_s22 = smov 8  }
  0x2c   : > { %3128 = dma.hbm_to_vmem [thread:$0]  (!%p3925_p11), %s4149_s3, 8192, %s245_s14, [#allocation9], %s3823_s21, %s3823_s21, %s3824_s22  }
  0x2d   : > { %s3825_s10 = smov [#allocation7]   ;;  %s3826_s13 = smov [#allocation10]  }
  0x2e   : > { %s234_s11 = sshll.u32 %s3825_s10, 4  ;;  %s260_s15 = sshll.u32 %s3826_s13, 4  ;;  %s235_s11 = int_to_ptr.vmem [resolvable:$true] %s234_s11  ;;  %s261_s15 = int_to_ptr.vmem [resolvable:$true] %s260_s15 }
  0x2f   : > { %s3676_s16 = scalar_lea.vmem %s235_s11, 64  ;;  %p3684_p3 = scmp.lt.s32.totalorder %s235_s11, %s235_s11 }
  0x30   : > { %p3677_p1 = scmp.ne.s32.totalorder %s235_s11, %s3676_s16  ;;  %p3685_p7 = scmp.lt.s32.totalorder %s3676_s16, %s3676_s16 }
  0x32   : > { %p3679_p2 = pnand %p3677_p1, %p3615_p12  ;;  %p3686_p9 = por %p3685_p7, %p3684_p3 }
  0x34   : > { %p3680_p6 = pneg %p3679_p2 }
  0x36   : > { %p3687_p13 = pnand %p3686_p9, %p3680_p6 }
  0x38   : > { %3690 = shalt.err (!%p3687_p13)
}
  0x39   : > { %3125 = dma.hbm_to_vmem [thread:$0]  (!%p3925_p11), %s4148_s2, 64, %s235_s11, [#allocation6]  }
  0x3a   : > { %s3702_s18 = scalar_lea.vmem %s261_s15, 2048  ;;  %p3710_p1 = scmp.lt.s32.totalorder %s261_s15, %s261_s15 }
  0x3b   : > { %p3703_p0 = scmp.ne.s32.totalorder %s261_s15, %s3702_s18  ;;  %p3711_p2 = scmp.lt.s32.totalorder %s3702_s18, %s3702_s18 }
  0x3d   : > { %p3705_p5 = pnand %p3703_p0, %p3615_p12  ;;  %p3712_p4 = por %p3711_p2, %p3710_p1 }
  0x3f   : > { %p3706_p10 = pneg %p3705_p5 }
  0x41   : > { %p3713_p8 = pnand %p3712_p4, %p3706_p10 }
  0x43   : > { %3716 = shalt.err (!%p3713_p8)
}
  0x44   : > { %s3827_s19 = smov 64   ;;  %s3828_s20 = smov 4  }
  0x45   : > { %3131 = dma.hbm_to_vmem [thread:$0]  (!%p3925_p11), %s4151_s5, 2048, %s261_s15, [#allocation9], %s3827_s19, %s3827_s19, %s3828_s20  }
  0x46   : > { %s3964_s23 = sadd.s32 1, %s3817_s27   ;;  %s32_s10 = sadd.s32 1, %s3813_s26 }
  0x47   : > { %s29_s29 = ssub.s32 %s3817_s27, %s3964_s23  ;;  %p39_p8 = scmp.ne.s32.totalorder %s3813_s26, %s3809_s25 }
  0x48   : > { %p30_p4 = scmp.eq.s32.totalorder %s29_s29, 0  ;;  %p40_p12 = scmp.eq.s32.totalorder %s3817_s27, 0 }
  0x49   : > { %p4164_p3 = scmp.eq.s32.totalorder %s3897_s28, 1  ;;  %p3144_p9 = scmp.lt.s32.totalorder %s3817_s27, 2 }
  0x4a   : > { %s3973_s11 = scalar_select %p30_p4, %s3813_s26, %s32_s10  }
  0x4b   : > { %p41_p6 = por %p40_p12, %p39_p8  ;;  %p3977_p7 = por %p4164_p3, %p39_p8 }
  0x4c   : > { %s277_s12 = sand.u32 1, %s3813_s26   ;;  %s3097_s15 = smul.u32 896, %s3817_s27 }
  0x4d   : > { %s4165_s13 = scalar_select %p3977_p7, 1, 0 }
  0x4e   : > { %s3096_s16 = smul.u32 56, %s277_s12  ;;  %p3984_p11 = pnand %p3144_p9, %p41_p6 }
  0x4f   : > { %s3991_s19 = scalar_lea.hbm %s4146_s0, %s3097_s15  ;;  %s3995_s22 = scalar_lea.sflag [#allocation3], %s277_s12 }
  0x50   : > { %s281_s20 = scalar_lea.vmem [#allocation2], %s3096_s16  ;;  %s3717_s29 = scalar_lea.hbm %s3991_s19, 896 }
  0x51   : > { %s289_s21 = sshll.u32 %s281_s20, 4  ;;  %p3718_p13 = scmp.ne.s32.totalorder %s3991_s19, %s3717_s29  ;;  %s3993_s21 = int_to_ptr.vmem [resolvable:$true] %s289_s21 }
  0x52   : > { %p3719_p0 = pneg %p3984_p11  ;;  %s3722_s15 = scalar_lea.hbm %s4146_s0, 1792 }
  0x53   : > { %p3723_p1 = scmp.lt.s32.totalorder %s3991_s19, %s4146_s0  ;;  %p3724_p2 = scmp.lt.s32.totalorder %s3722_s15, %s3717_s29 }
  0x54   : > { %p3720_p5 = pnand %p3719_p0, %p3718_p13 }
  0x55   : > { %p3725_p4 = por %p3724_p2, %p3723_p1 }
  0x56   : > { %p3721_p10 = pneg %p3720_p5 }
  0x58   : > { %p3726_p8 = pnand %p3725_p4, %p3721_p10 }
  0x5a   : > { %3729 = shalt.err (!%p3726_p8)
}
  0x5b   : > { %s3730_s12 = scalar_lea.vmem %s3993_s21, 896  ;;  %s3829_s16 = smov [#allocation2]  }
  0x5c   : > { %p3731_p12 = scmp.ne.s32.totalorder %s3993_s21, %s3730_s12  ;;  %s3735_s20 = sshll.u32 %s3829_s16, 4  ;;  %s3736_s20 = int_to_ptr.vmem [resolvable:$false] %s3735_s20 }
  0x5d   : > { %s3737_s10 = scalar_lea.vmem %s3736_s20, 1792  ;;  %p3738_p9 = scmp.lt.s32.totalorder %s3993_s21, %s3736_s20 }
  0x5e   : > { %p3733_p6 = pnand %p3731_p12, %p3719_p0  ;;  %p3739_p13 = scmp.lt.s32.totalorder %s3737_s10, %s3730_s12 }
  0x60   : > { %p3734_p3 = pneg %p3733_p6  ;;  %p3740_p5 = por %p3739_p13, %p3738_p9 }
  0x62   : > { %p3741_p7 = pnand %p3740_p5, %p3734_p3 }
  0x64   : > { %3744 = shalt.err (!%p3741_p7)
}
  0x65   : > { %s3830_s1 = smov 448   ;;  %s3831_s29 = smov 28  }
  0x66   : > { %3135 = dma.hbm_to_vmem [thread:$0]  (!%p3984_p11), %s3991_s19, 896, %s3993_s21, %s3995_s22, %s3830_s1, %s3830_s1, %s3831_s29  }
  0x67   : > { %p4167_p0 = scmp.ne.s32.totalorder %s4161_s9, 0 }
  0x68   : > { %s4019_s17 = sand.u32 (!%p4167_p0), 1, %s3809_s25   ;;  %p4168_p7 = scmp.ne.s32.totalorder (!%p4167_p0), %s4159_s30, 0 }
  0x69   : > { %301 = sbr.rel (%p4167_p0) target bundleno = 959 (0x3bf), region = 48  ;;  %s304_s18 = scalar_lea.sflag (!%p4167_p0), [#allocation3], %s4019_s17 }
  0x6a   : > { %s3098_s15 = smul.u32 (!%p4167_p0), 56, %s4019_s17 }
  0x6c   : > { %s4023_s12 = scalar_lea.vmem (!%p4167_p0), [#allocation2], %s3098_s15 }
  0x6e   : > { %3788 = dma.done.wait (%p4168_p7), %s304_s18, 896  }
  0x6f   : > { %3790 = vsyncadd (%p4168_p7), %s304_s18, 4294966400  ;;  %p4169_p11 = scmp.eq.s32.totalorder %s3897_s28, 0 }
  0x71   : > { %3792 = dma.done.wait (%p4169_p11), [#allocation6], 25152   ;;  %p4170_p10 = pmov %p4169_p11 }
  0x73   : > { %3794 = vsyncadd (%p4170_p10), [#allocation6], 4294942144  ;;  %p4171_p1 = pmov %p4170_p10 }
  0x75   : > { %3796 = dma.done.wait (%p4171_p1), [#allocation9], 10240   ;;  %p4172_p2 = pmov %p4171_p1 }
  0x76   : > { %v3197_v0 = vld [vmem:[#allocation5 + $0xe4] ss:$16 sps:$4 sm:$0xff]   ;;  %v3201_v2 = vld [vmem:[#allocation5 + $0xe0] ss:$16 sps:$4 sm:$0xff]   ;;  %vm1598_vm0 = vcmask 130048   ;;  %s2772_s14 = sshll.u32 %s4019_s17, 3 }
  0x77   : > { %3798 = vsyncadd (%p4172_p2), [#allocation9], 4294957056  ;;  %v3199_v1 = vld [vmem:[#allocation5 + $0x2e4] ss:$16 sps:$4 sm:$0xff]   ;;  %1602 = vmatprep.subr.bf16.mxu0 %v3197_v0  ;;  %v3202_v3 = vld [vmem:[#allocation5 + $0x2e0] ss:$16 sps:$4 sm:$0xff]  }
  0x78   : > { %1645 = vmatprep.subr.bf16.mxu1 %v3199_v1  ;;  %v3203_v4 = vld [vmem:[#allocation5 + $0xc4] ss:$16 sps:$4 sm:$0xff]   ;;  %1603 = vmatpush1.bf16.msra.mxu0 %v3201_v2  ;;  %v3207_v6 = vld [vmem:[#allocation5 + $0xc0] ss:$16 sps:$4 sm:$0xff]   ;;  %s3068_s22 = sshll.u32 %s3897_s28, 7  ;;  %s353_s16 = scalar_lea.vmem [#allocation11], %s2772_s14 }
  0x79   : > { %1646 = vmatpush1.bf16.msra.mxu1 %v3202_v3  ;;  %v3205_v5 = vld [vmem:[#allocation5 + $0x2c4] ss:$16 sps:$4 sm:$0xff]   ;;  %1604 = vmatprep.subr.bf16.mxu0 %v3203_v4  ;;  %v3208_v7 = vld [vmem:[#allocation5 + $0x2c0] ss:$16 sps:$4 sm:$0xff]   ;;  %s2646_s20 = sshll.u32 %s353_s16, 4  ;;  %s4101_s29 = scalar_lea.hbm %s4153_s7, %s3068_s22  ;;  %s4103_s20 = int_to_ptr.vmem [resolvable:$true] %s2646_s20 }
  0x7a   : > { %1647 = vmatprep.subr.bf16.mxu1 %v3205_v5  ;;  %v3209_v8 = vld [vmem:[#allocation5 + $0xa4] ss:$16 sps:$4 sm:$0xff]   ;;  %v3213_v10 = vld [vmem:[#allocation5 + $0xa0] ss:$16 sps:$4 sm:$0xff]   ;;  %s2633_s15 = scalar_lea.sflag [#allocation4], %s4019_s17  ;;  %s3745_s18 = scalar_lea.vmem %s4103_s20, 128 }
  0x7b   : > { %v3211_v9 = vld [vmem:[#allocation5 + $0x2a4] ss:$16 sps:$4 sm:$0xff]   ;;  %v3214_v11 = vld [vmem:[#allocation5 + $0x2a0] ss:$16 sps:$4 sm:$0xff]   ;;  %p3746_p4 = scmp.ne.s32.totalorder %s4103_s20, %s3745_s18  ;;  %p4173_p8 = scmp.ne.s32.totalorder %s4165_s13, 0 }
  0x7c   : > { %1605 = vmatpush1.bf16.msra.mxu0 %v3207_v6  ;;  %v3215_v12 = vld [vmem:[#allocation5 + $0x84] ss:$16 sps:$4 sm:$0xff]   ;;  %v3219_v14 = vld [vmem:[#allocation5 + $0x80] ss:$16 sps:$4 sm:$0xff]   ;;  %s3833_s28 = smov [#allocation11]  }
  0x7d   : > { %1648 = vmatpush1.bf16.msra.mxu1 %v3208_v7  ;;  %1606 = vmatprep.subr.bf16.mxu0 %v3209_v8  ;;  %v3217_v13 = vld [vmem:[#allocation5 + $0x284] ss:$16 sps:$4 sm:$0xff]   ;;  %v3220_v15 = vld [vmem:[#allocation5 + $0x280] ss:$16 sps:$4 sm:$0xff]   ;;  %p3747_p12 = pnand %p3746_p4, %p4173_p8 }
  0x7e   : > { %1649 = vmatprep.subr.bf16.mxu1 %v3211_v9  ;;  %v3221_v16 = vld [vmem:[#allocation5 + $0x64] ss:$16 sps:$4 sm:$0xff]   ;;  %v3225_v18 = vld [vmem:[#allocation5 + $0x60] ss:$16 sps:$4 sm:$0xff]   ;;  %v3310_v9 = vld [vmem:[#allocation5 + $0xec] ss:$16 sps:$4 sm:$0xff]  }
  0x7f   : > { %v3223_v17 = vld [vmem:[#allocation5 + $0x264] ss:$16 sps:$4 sm:$0xff]   ;;  %v3226_v19 = vld [vmem:[#allocation5 + $0x260] ss:$16 sps:$4 sm:$0xff]   ;;  %p3748_p6 = pneg %p3747_p12 }
  0x80   : > { %1607 = vmatpush1.bf16.msra.mxu0 %v3213_v10  ;;  %v3227_v20 = vld [vmem:[#allocation5 + $0x44] ss:$16 sps:$4 sm:$0xff]   ;;  %v3231_v22 = vld [vmem:[#allocation5 + $0x40] ss:$16 sps:$4 sm:$0xff]  }
  0x81   : > { %1650 = vmatpush1.bf16.msra.mxu1 %v3214_v11  ;;  %1608 = vmatprep.subr.bf16.mxu0 %v3215_v12  ;;  %v3229_v21 = vld [vmem:[#allocation5 + $0x244] ss:$16 sps:$4 sm:$0xff]   ;;  %v3232_v23 = vld [vmem:[#allocation5 + $0x240] ss:$16 sps:$4 sm:$0xff]   ;;  %v3832_v11 = vmov 0  }
  0x82   : > { %1651 = vmatprep.subr.bf16.mxu1 %v3217_v13  ;;  %v3233_v24 = vld [vmem:[#allocation5 + $0x24] ss:$16 sps:$4 sm:$0xff]   ;;  %v3237_v26 = vld [vmem:[#allocation5 + $0x20] ss:$16 sps:$4 sm:$0xff]   ;;  %v3308_v13 = vld [vmem:[#allocation5 + $0xe8] ss:$16 sps:$4 sm:$0xff]  }
  0x83   : > { %v3235_v25 = vld [vmem:[#allocation5 + $0x224] ss:$16 sps:$4 sm:$0xff]   ;;  %v3238_v27 = vld [vmem:[#allocation5 + $0x220] ss:$16 sps:$4 sm:$0xff]  }
  0x84   : > { %1609 = vmatpush1.bf16.msra.mxu0 %v3219_v14  ;;  %v3239_v28 = vld [vmem:[#allocation5 + $0x4] ss:$16 sps:$4 sm:$0xff]   ;;  %v3243_v30 = vld [vmem:[#allocation5] ss:$16 sps:$4 sm:$0xff]  }
  0x85   : > { %1652 = vmatpush1.bf16.msra.mxu1 %v3220_v15  ;;  %1610 = vmatprep.subr.bf16.mxu0 %v3221_v16  ;;  %v3241_v29 = vld [vmem:[#allocation5 + $0x204] ss:$16 sps:$4 sm:$0xff]   ;;  %v3244_v31 = vld [vmem:[#allocation5 + $0x200] ss:$16 sps:$4 sm:$0xff]   ;;  %v3317_v16 = vld [vmem:[#allocation5 + $0xcc] ss:$16 sps:$4 sm:$0xff]  }
  0x86   : > { %1653 = vmatprep.subr.bf16.mxu1 %v3223_v17  ;;  %v3245_v32 = vld [vmem:[#allocation5 + $0x1e4] ss:$16 sps:$4 sm:$0xff]   ;;  %v3249_v34 = vld [vmem:[#allocation5 + $0x1e0] ss:$16 sps:$4 sm:$0xff]  }
  0x87   : > { %v3247_v33 = vld [vmem:[#allocation5 + $0x3e4] ss:$16 sps:$4 sm:$0xff]   ;;  %v3250_v35 = vld [vmem:[#allocation5 + $0x3e0] ss:$16 sps:$4 sm:$0xff]  }
  0x88   : > { %1611 = vmatpush1.bf16.msra.mxu0 %v3225_v18  ;;  %v3251_v36 = vld [vmem:[#allocation5 + $0x1c4] ss:$16 sps:$4 sm:$0xff]   ;;  %v3255_v38 = vld [vmem:[#allocation5 + $0x1c0] ss:$16 sps:$4 sm:$0xff]   ;;  %v3315_v18 = vld [vmem:[#allocation5 + $0xc8] ss:$16 sps:$4 sm:$0xff]  }
  0x89   : > { %1654 = vmatpush1.bf16.msra.mxu1 %v3226_v19  ;;  %1612 = vmatprep.subr.bf16.mxu0 %v3227_v20  ;;  %v3253_v37 = vld [vmem:[#allocation5 + $0x3c4] ss:$16 sps:$4 sm:$0xff]   ;;  %v3256_v39 = vld [vmem:[#allocation5 + $0x3c0] ss:$16 sps:$4 sm:$0xff]   ;;  %v3323_v20 = vld [vmem:[#allocation5 + $0xac] ss:$16 sps:$4 sm:$0xff]  }
  0x8a   : > { %1655 = vmatprep.subr.bf16.mxu1 %v3229_v21  ;;  %v3257_v40 = vld [vmem:[#allocation5 + $0x1a4] ss:$16 sps:$4 sm:$0xff]   ;;  %v3261_v42 = vld [vmem:[#allocation5 + $0x1a0] ss:$16 sps:$4 sm:$0xff]  }
  0x8b   : > { %v3259_v41 = vld [vmem:[#allocation5 + $0x3a4] ss:$16 sps:$4 sm:$0xff]   ;;  %v3262_v43 = vld [vmem:[#allocation5 + $0x3a0] ss:$16 sps:$4 sm:$0xff]  }
  0x8c   : > { %1613 = vmatpush1.bf16.msra.mxu0 %v3231_v22  ;;  %v3263_v44 = vld [vmem:[#allocation5 + $0x184] ss:$16 sps:$4 sm:$0xff]   ;;  %v3267_v46 = vld [vmem:[#allocation5 + $0x180] ss:$16 sps:$4 sm:$0xff]   ;;  %v3321_v22 = vld [vmem:[#allocation5 + $0xa8] ss:$16 sps:$4 sm:$0xff]  }
  0x8d   : > { %1656 = vmatpush1.bf16.msra.mxu1 %v3232_v23  ;;  %1614 = vmatprep.subr.bf16.mxu0 %v3233_v24  ;;  %v3265_v45 = vld [vmem:[#allocation5 + $0x384] ss:$16 sps:$4 sm:$0xff]   ;;  %v3268_v47 = vld [vmem:[#allocation5 + $0x380] ss:$16 sps:$4 sm:$0xff]   ;;  %v3329_v24 = vld [vmem:[#allocation5 + $0x8c] ss:$16 sps:$4 sm:$0xff]  }
  0x8e   : > { %1657 = vmatprep.subr.bf16.mxu1 %v3235_v25  ;;  %v3269_v48 = vld [vmem:[#allocation5 + $0x164] ss:$16 sps:$4 sm:$0xff]   ;;  %v3273_v52 = vld [vmem:[#allocation5 + $0x160] ss:$16 sps:$4 sm:$0xff]  }
  0x8f   : > { %v4038_v49 = vld [vmem:[%s4023_s12 + $0x4] ss:$28 sps:$4 sm:$0xff]   ;;  %v4041_v51 = vld [vmem:[%s4023_s12 + $0xc] ss:$28 sps:$4 sm:$0xff]   ;;  %v4055_v14 = vld [vmem:[%s4023_s12 + $0x18] ss:$28 sps:$4 sm:$0xff]  }
  0x90   : > { %1615 = vmatpush1.bf16.msra.mxu0 %v3237_v26  ;;  %v3271_v50 = vld [vmem:[#allocation5 + $0x364] ss:$16 sps:$4 sm:$0xff]   ;;  %1634 = vmatprep.mubr.bf16.mxu0 %v4038_v49  ;;  %v3274_v53 = vld [vmem:[#allocation5 + $0x360] ss:$16 sps:$4 sm:$0xff]   ;;  %v3327_v26 = vld [vmem:[#allocation5 + $0x88] ss:$16 sps:$4 sm:$0xff]  }
  0x91   : > { %1658 = vmatpush1.bf16.msra.mxu1 %v3238_v27  ;;  %1616 = vmatprep.subr.bf16.mxu0 %v3239_v28  ;;  %v3275_v54 = vld [vmem:[#allocation5 + $0x144] ss:$16 sps:$4 sm:$0xff]   ;;  %v3279_v56 = vld [vmem:[#allocation5 + $0x140] ss:$16 sps:$4 sm:$0xff]   ;;  %v3335_v28 = vld [vmem:[#allocation5 + $0x6c] ss:$16 sps:$4 sm:$0xff]  }
  0x92   : > { %1659 = vmatprep.subr.bf16.mxu1 %v3241_v29  ;;  %1677 = vmatprep.mubr.bf16.mxu1 %v4041_v51  ;;  %v3277_v55 = vld [vmem:[#allocation5 + $0x344] ss:$16 sps:$4 sm:$0xff]   ;;  %v3280_v57 = vld [vmem:[#allocation5 + $0x340] ss:$16 sps:$4 sm:$0xff]  }
  0x93   : > { %v3281_v58 = vld [vmem:[#allocation5 + $0x124] ss:$16 sps:$4 sm:$0xff]   ;;  %v3285_v60 = vld [vmem:[#allocation5 + $0x120] ss:$16 sps:$4 sm:$0xff]  }
  0x94   : > { %1617 = vmatpush1.bf16.msra.mxu0 %v3243_v30  ;;  %v3283_v59 = vld [vmem:[#allocation5 + $0x324] ss:$16 sps:$4 sm:$0xff]   ;;  %v3286_v61 = vld [vmem:[#allocation5 + $0x320] ss:$16 sps:$4 sm:$0xff]   ;;  %v3333_v30 = vld [vmem:[#allocation5 + $0x68] ss:$16 sps:$4 sm:$0xff]  }
  0x95   : > { %1660 = vmatpush1.bf16.msra.mxu1 %v3244_v31  ;;  %1618 = vmatprep.subr.bf16.mxu0 %v3245_v32  ;;  %v3287_v62 = vld [vmem:[#allocation5 + $0x104] ss:$16 sps:$4 sm:$0xff]   ;;  %v3291_v0 = vld [vmem:[#allocation5 + $0x100] ss:$16 sps:$4 sm:$0xff]   ;;  %v3341_v32 = vld [vmem:[#allocation5 + $0x4c] ss:$16 sps:$4 sm:$0xff]  }
  0x96   : > { %1661 = vmatprep.subr.bf16.mxu1 %v3247_v33  ;;  %v3289_v63 = vld [vmem:[#allocation5 + $0x304] ss:$16 sps:$4 sm:$0xff]   ;;  %v3292_v1 = vld [vmem:[#allocation5 + $0x300] ss:$16 sps:$4 sm:$0xff]  }
  0x97   : > { %v3301_v2 = vld [vmem:[#allocation5 + $0x4e4] ss:$16 sps:$4 sm:$0xff]   ;;  %v3299_v6 = vld [vmem:[#allocation5 + $0x4e0] ss:$16 sps:$4 sm:$0xff]  }
  0x98   : > { %1619 = vmatpush2.bf16.msra.mxu0 %v3249_v34  ;;  %v3304_v3 = vld [vmem:[#allocation5 + $0x604] ss:$16 sps:$4 sm:$0xff]   ;;  %v3302_v7 = vld [vmem:[#allocation5 + $0x600] ss:$16 sps:$4 sm:$0xff]  }
  0x99   : > { %1662 = vmatpush2.bf16.msra.mxu1 %v3250_v35  ;;  %1620 = vmatprep.subr.bf16.mxu0 %v3251_v36  ;;  %v4046_v4 = vld [vmem:[%s4023_s12] ss:$28 sps:$4 sm:$0xff]   ;;  %v4049_v5 = vld [vmem:[%s4023_s12 + $0x8] ss:$28 sps:$4 sm:$0xff]   ;;  %v4061_v33 = vld [vmem:[%s4023_s12 + $0x14] ss:$28 sps:$4 sm:$0xff]  }
  0x9a   : > { %1663 = vmatprep.subr.bf16.mxu1 %v3253_v37  ;;  %v3307_v8 = vld [vmem:[#allocation5 + $0x4c4] ss:$16 sps:$4 sm:$0xff]   ;;  %v3305_v10 = vld [vmem:[#allocation5 + $0x4c0] ss:$16 sps:$4 sm:$0xff]   ;;  %v3339_v35 = vld [vmem:[#allocation5 + $0x48] ss:$16 sps:$4 sm:$0xff]  }
  0x9b   : > { %v3313_v12 = vld [vmem:[#allocation5 + $0x4a4] ss:$16 sps:$4 sm:$0xff]   ;;  %v3311_v15 = vld [vmem:[#allocation5 + $0x4a0] ss:$16 sps:$4 sm:$0xff]   ;;  %v3347_v37 = vld [vmem:[#allocation5 + $0x2c] ss:$16 sps:$4 sm:$0xff]  }
  0x9c   : > { %1621 = vmatpush2.bf16.msra.mxu0 %v3255_v38  ;;  %v3320_v17 = vld [vmem:[#allocation5 + $0x484] ss:$16 sps:$4 sm:$0xff]   ;;  %v3318_v19 = vld [vmem:[#allocation5 + $0x480] ss:$16 sps:$4 sm:$0xff]  }
  0x9d   : > { %1664 = vmatpush2.bf16.msra.mxu1 %v3256_v39  ;;  %1622 = vmatprep.subr.bf16.mxu0 %v3257_v40  ;;  %v3326_v21 = vld [vmem:[#allocation5 + $0x464] ss:$16 sps:$4 sm:$0xff]   ;;  %v3324_v23 = vld [vmem:[#allocation5 + $0x460] ss:$16 sps:$4 sm:$0xff]   ;;  %v3345_v39 = vld [vmem:[#allocation5 + $0x28] ss:$16 sps:$4 sm:$0xff]  }
  0x9e   : > { %1665 = vmatprep.subr.bf16.mxu1 %v3259_v41  ;;  %v3332_v25 = vld [vmem:[#allocation5 + $0x444] ss:$16 sps:$4 sm:$0xff]   ;;  %v3330_v27 = vld [vmem:[#allocation5 + $0x440] ss:$16 sps:$4 sm:$0xff]   ;;  %v3353_v41 = vld [vmem:[#allocation5 + $0xc] ss:$16 sps:$4 sm:$0xff]  }
  0x9f   : > { %v3338_v29 = vld [vmem:[#allocation5 + $0x424] ss:$16 sps:$4 sm:$0xff]   ;;  %v3336_v31 = vld [vmem:[#allocation5 + $0x420] ss:$16 sps:$4 sm:$0xff]  }
  0xa0   : > { %1623 = vmatpush2.bf16.msra.mxu0 %v3261_v42  ;;  %v3344_v34 = vld [vmem:[#allocation5 + $0x404] ss:$16 sps:$4 sm:$0xff]   ;;  %v3342_v36 = vld [vmem:[#allocation5 + $0x400] ss:$16 sps:$4 sm:$0xff]  }
  0xa1   : > { %1666 = vmatpush2.bf16.msra.mxu1 %v3262_v43  ;;  %1624 = vmatprep.subr.bf16.mxu0 %v3263_v44  ;;  %v3350_v38 = vld [vmem:[#allocation5 + $0x5e4] ss:$16 sps:$4 sm:$0xff]   ;;  %v3348_v40 = vld [vmem:[#allocation5 + $0x5e0] ss:$16 sps:$4 sm:$0xff]   ;;  %v3351_v43 = vld [vmem:[#allocation5 + $0x8] ss:$16 sps:$4 sm:$0xff]  }
  0xa2   : > { %1667 = vmatprep.subr.bf16.mxu1 %v3265_v45  ;;  %v3356_v42 = vld [vmem:[#allocation5 + $0x5c4] ss:$16 sps:$4 sm:$0xff]   ;;  %v3354_v44 = vld [vmem:[#allocation5 + $0x5c0] ss:$16 sps:$4 sm:$0xff]   ;;  %v3359_v45 = vld [vmem:[#allocation5 + $0x1ec] ss:$16 sps:$4 sm:$0xff]  }
  0xa4   : > { %1625 = vmatpush2.bf16.msra.mxu0 %v3267_v46  ;;  %v3362_v46 = vld [vmem:[#allocation5 + $0x5a4] ss:$16 sps:$4 sm:$0xff]  }
  0xa5   : > { %1668 = vmatpush2.bf16.msra.mxu1 %v3268_v47  ;;  %1626 = vmatprep.subr.bf16.mxu0 %v3269_v48  ;;  %v3357_v47 = vld [vmem:[#allocation5 + $0x1e8] ss:$16 sps:$4 sm:$0xff]   ;;  %v3360_v48 = vld [vmem:[#allocation5 + $0x5a0] ss:$16 sps:$4 sm:$0xff]  }
  0xa6   : > { %1669 = vmatprep.subr.bf16.mxu1 %v3271_v50  ;;  %v3368_v50 = vld [vmem:[#allocation5 + $0x584] ss:$16 sps:$4 sm:$0xff]  }
  0xa8   : > { %1627 = vmatpush2.bf16.msra.mxu0 %v3273_v52  ;;  %v3363_v52 = vld [vmem:[#allocation5 + $0x1c8] ss:$16 sps:$4 sm:$0xff]  }
  0xa9   : > { %1670 = vmatpush2.bf16.msra.mxu1 %v3274_v53  ;;  %1628 = vmatprep.subr.bf16.mxu0 %v3275_v54  ;;  %v3366_v53 = vld [vmem:[#allocation5 + $0x580] ss:$16 sps:$4 sm:$0xff]   ;;  %v3371_v54 = vld [vmem:[#allocation5 + $0x1ac] ss:$16 sps:$4 sm:$0xff]  }
  0xaa   : > { %1671 = vmatprep.subr.bf16.mxu1 %v3277_v55  ;;  %v3374_v55 = vld [vmem:[#allocation5 + $0x564] ss:$16 sps:$4 sm:$0xff]  }
  0xac   : > { %1629 = vmatpush2.bf16.msra.mxu0 %v3279_v56  ;;  %v3369_v56 = vld [vmem:[#allocation5 + $0x1a8] ss:$16 sps:$4 sm:$0xff]  }
  0xad   : > { %1672 = vmatpush2.bf16.msra.mxu1 %v3280_v57  ;;  %1630 = vmatprep.subr.bf16.mxu0 %v3281_v58  ;;  %v3372_v57 = vld [vmem:[#allocation5 + $0x560] ss:$16 sps:$4 sm:$0xff]   ;;  %v3377_v58 = vld [vmem:[#allocation5 + $0x18c] ss:$16 sps:$4 sm:$0xff]  }
  0xae   : > { %1673 = vmatprep.subr.bf16.mxu1 %v3283_v59  ;;  %v3380_v59 = vld [vmem:[#allocation5 + $0x544] ss:$16 sps:$4 sm:$0xff]  }
  0xb0   : > { %1631 = vmatpush2.bf16.msra.mxu0 %v3285_v60  ;;  %v3375_v60 = vld [vmem:[#allocation5 + $0x188] ss:$16 sps:$4 sm:$0xff]  }
  0xb1   : > { %1674 = vmatpush2.bf16.msra.mxu1 %v3286_v61  ;;  %1632 = vmatprep.subr.bf16.mxu0 %v3287_v62  ;;  %v3378_v61 = vld [vmem:[#allocation5 + $0x540] ss:$16 sps:$4 sm:$0xff]   ;;  %v3383_v62 = vld [vmem:[#allocation5 + $0x16c] ss:$16 sps:$4 sm:$0xff]  }
  0xb2   : > { %1675 = vmatprep.subr.bf16.mxu1 %v3289_v63  ;;  %v3386_v63 = vld [vmem:[#allocation5 + $0x524] ss:$16 sps:$4 sm:$0xff]  }
  0xb4   : > { %1633 = vmatpush2.bf16.msra.mxu0 %v3291_v0  ;;  %v3381_v0 = vld [vmem:[#allocation5 + $0x168] ss:$16 sps:$4 sm:$0xff]  }
  0xb5   : > { %1676 = vmatpush2.bf16.msra.mxu1 %v3292_v1  ;;  %1688 = vmatprep.subr.bf16.mxu0 %v3301_v2  ;;  %v3384_v1 = vld [vmem:[#allocation5 + $0x520] ss:$16 sps:$4 sm:$0xff]   ;;  %v3389_v2 = vld [vmem:[#allocation5 + $0x14c] ss:$16 sps:$4 sm:$0xff]  }
  0xb6   : > { %1745 = vmatprep.subr.bf16.mxu1 %v3304_v3  ;;  %v3392_v3 = vld [vmem:[#allocation5 + $0x504] ss:$16 sps:$4 sm:$0xff]  }
  0xb7   : > { %1635 = vmatmul.mubr.bf16.vlgmr.msra.gmra.mxu0 %v4046_v4 }
  0xb8   : > { %1678 = vmatmul.mubr.bf16.vlgmr.msra.gmra.mxu1 %v4049_v5  ;;  %1689 = vmatpush1.bf16.msra.mxu0 %v3299_v6  ;;  %v3387_v6 = vld [vmem:[#allocation5 + $0x148] ss:$16 sps:$4 sm:$0xff]  }
  0xb9   : > { %1746 = vmatpush1.bf16.msra.mxu1 %v3302_v7  ;;  %1690 = vmatprep.subr.bf16.mxu0 %v3307_v8  ;;  %v3390_v7 = vld [vmem:[#allocation5 + $0x500] ss:$16 sps:$4 sm:$0xff]   ;;  %v3398_v8 = vld [vmem:[#allocation5 + $0x12c] ss:$16 sps:$4 sm:$0xff]  }
  0xba   : > { %1763 = vmatprep.mubr.bf16.mxu1 %v3832_v11  ;;  %1774 = vmatprep.subr.bf16.mxu1 %v3310_v9  ;;  %v3401_v9 = vld [vmem:[#allocation5 + $0x2ec] ss:$16 sps:$4 sm:$0xff]  }
  0xbb   : > { %1720 = vmatprep.mubr.bf16.mxu0 %v4061_v33 }
  0xbc   : > { %1691 = vmatpush1.bf16.msra.mxu0 %v3305_v10  ;;  %v4065_v10 = vld [vmem:[%s4023_s12 + $0x10] ss:$28 sps:$4 sm:$0xff]   ;;  %s3749_s12 = sshll.u32 %s3833_s28, 4  ;;  %s3750_s12 = int_to_ptr.vmem [resolvable:$false] %s3749_s12 }
  0xbd   : > { %1692 = vmatprep.subr.bf16.mxu0 %v3313_v12  ;;  %v3396_v12 = vld [vmem:[#allocation5 + $0x128] ss:$16 sps:$4 sm:$0xff]   ;;  %s3751_s30 = scalar_lea.vmem %s3750_s12, 256  ;;  %p3752_p3 = scmp.lt.s32.totalorder %s4103_s20, %s3750_s12 }
  0xbe   : > { %p3753_p9 = scmp.lt.s32.totalorder %s3751_s30, %s3745_s18 }
  0xc0   : > { %2976 = vmatmul.mubr.msk.bf16.vlgmr.msra.gmra.mxu1 %vm1598_vm0, %v4055_v14  ;;  %1693 = vmatpush1.bf16.msra.mxu0 %v3311_v15  ;;  %v3404_v15 = vld [vmem:[#allocation5 + $0x10c] ss:$16 sps:$4 sm:$0xff]   ;;  %p3754_p13 = por %p3753_p9, %p3752_p3 }
  0xc1   : > { %1775 = vmatpush1.bf16.msra.mxu1 %v3308_v13  ;;  %1694 = vmatprep.subr.bf16.mxu0 %v3320_v17  ;;  %v3399_v13 = vld [vmem:[#allocation5 + $0x2e8] ss:$16 sps:$4 sm:$0xff]  }
  0xc2   : > { %1776 = vmatprep.subr.bf16.mxu1 %v3317_v16  ;;  %1806 = vmatprep.mubr.bf16.mxu1 %v4038_v49  ;;  %v3365_v49 = vld [vmem:[#allocation5 + $0x1cc] ss:$16 sps:$4 sm:$0xff]   ;;  %v3402_v17 = vld [vmem:[#allocation5 + $0x108] ss:$16 sps:$4 sm:$0xff]   ;;  %p3755_p5 = pnand %p3754_p13, %p3748_p6 }
  0xc3   : > { %v3407_v16 = vld [vmem:[#allocation5 + $0x2cc] ss:$16 sps:$4 sm:$0xff]  }
  0xc4   : > { %1695 = vmatpush1.bf16.msra.mxu0 %v3318_v19  ;;  %v3410_v19 = vld [vmem:[#allocation5 + $0x4ec] ss:$16 sps:$4 sm:$0xff]  }
  0xc5   : > { %1777 = vmatpush1.bf16.msra.mxu1 %v3315_v18  ;;  %1696 = vmatprep.subr.bf16.mxu0 %v3326_v21  ;;  %v3405_v18 = vld [vmem:[#allocation5 + $0x2c8] ss:$16 sps:$4 sm:$0xff]  }
  0xc6   : > { %1778 = vmatprep.subr.bf16.mxu1 %v3323_v20  ;;  %v3413_v20 = vld [vmem:[#allocation5 + $0x2ac] ss:$16 sps:$4 sm:$0xff]   ;;  %v3408_v21 = vld [vmem:[#allocation5 + $0x4e8] ss:$16 sps:$4 sm:$0xff]  }
  0xc8   : > { %1697 = vmatpush1.bf16.msra.mxu0 %v3324_v23  ;;  %v3416_v23 = vld [vmem:[#allocation5 + $0x4cc] ss:$16 sps:$4 sm:$0xff]  }
  0xc9   : > { %1779 = vmatpush1.bf16.msra.mxu1 %v3321_v22  ;;  %1698 = vmatprep.subr.bf16.mxu0 %v3332_v25  ;;  %v3411_v22 = vld [vmem:[#allocation5 + $0x2a8] ss:$16 sps:$4 sm:$0xff]  }
  0xca   : > { %1780 = vmatprep.subr.bf16.mxu1 %v3329_v24  ;;  %v3419_v24 = vld [vmem:[#allocation5 + $0x28c] ss:$16 sps:$4 sm:$0xff]   ;;  %v3414_v25 = vld [vmem:[#allocation5 + $0x4c8] ss:$16 sps:$4 sm:$0xff]  }
  0xcc   : > { %1699 = vmatpush1.bf16.msra.mxu0 %v3330_v27  ;;  %v3422_v27 = vld [vmem:[#allocation5 + $0x4ac] ss:$16 sps:$4 sm:$0xff]  }
  0xcd   : > { %1781 = vmatpush1.bf16.msra.mxu1 %v3327_v26  ;;  %1700 = vmatprep.subr.bf16.mxu0 %v3338_v29  ;;  %v3417_v26 = vld [vmem:[#allocation5 + $0x288] ss:$16 sps:$4 sm:$0xff]  }
  0xce   : > { %1782 = vmatprep.subr.bf16.mxu1 %v3335_v28  ;;  %v3425_v28 = vld [vmem:[#allocation5 + $0x26c] ss:$16 sps:$4 sm:$0xff]   ;;  %v3420_v29 = vld [vmem:[#allocation5 + $0x4a8] ss:$16 sps:$4 sm:$0xff]  }
  0xd0   : > { %1701 = vmatpush1.bf16.msra.mxu0 %v3336_v31  ;;  %v3431_v31 = vld [vmem:[#allocation5 + $0x24c] ss:$16 sps:$4 sm:$0xff]  }
  0xd1   : > { %1783 = vmatpush1.bf16.msra.mxu1 %v3333_v30  ;;  %1702 = vmatprep.subr.bf16.mxu0 %v3344_v34  ;;  %v3423_v30 = vld [vmem:[#allocation5 + $0x268] ss:$16 sps:$4 sm:$0xff]   ;;  %v3434_v34 = vld [vmem:[#allocation5 + $0x46c] ss:$16 sps:$4 sm:$0xff]  }
  0xd2   : > { %1784 = vmatprep.subr.bf16.mxu1 %v3341_v32  ;;  %v3426_v32 = vld [vmem:[#allocation5 + $0x488] ss:$16 sps:$4 sm:$0xff]  }
  0xd4   : > { %1703 = vmatpush1.bf16.msra.mxu0 %v3342_v36  ;;  %v3432_v36 = vld [vmem:[#allocation5 + $0x468] ss:$16 sps:$4 sm:$0xff]  }
  0xd5   : > { %1785 = vmatpush1.bf16.msra.mxu1 %v3339_v35  ;;  %1704 = vmatprep.subr.bf16.mxu0 %v3350_v38  ;;  %v3437_v35 = vld [vmem:[#allocation5 + $0x22c] ss:$16 sps:$4 sm:$0xff]  }
  0xd6   : > { %1786 = vmatprep.subr.bf16.mxu1 %v3347_v37  ;;  %v3435_v37 = vld [vmem:[#allocation5 + $0x228] ss:$16 sps:$4 sm:$0xff]   ;;  %v3440_v38 = vld [vmem:[#allocation5 + $0x44c] ss:$16 sps:$4 sm:$0xff]  }
  0xd8   : > { %1705 = vmatpush2.bf16.msra.mxu0 %v3348_v40  ;;  %v3441_v40 = vld [vmem:[#allocation5 + $0x208] ss:$16 sps:$4 sm:$0xff]  }
  0xd9   : > { %1787 = vmatpush1.bf16.msra.mxu1 %v3345_v39  ;;  %1706 = vmatprep.subr.bf16.mxu0 %v3356_v42  ;;  %v3438_v39 = vld [vmem:[#allocation5 + $0x448] ss:$16 sps:$4 sm:$0xff]   ;;  %v3449_v42 = vld [vmem:[#allocation5 + $0x3ec] ss:$16 sps:$4 sm:$0xff]  }
  0xda   : > { %1788 = vmatprep.subr.bf16.mxu1 %v3353_v41  ;;  %v3446_v41 = vld [vmem:[#allocation5 + $0x42c] ss:$16 sps:$4 sm:$0xff]  }
  0xdc   : > { %1707 = vmatpush2.bf16.msra.mxu0 %v3354_v44  ;;  %v3447_v44 = vld [vmem:[#allocation5 + $0x3e8] ss:$16 sps:$4 sm:$0xff]  }
  0xdd   : > { %1789 = vmatpush1.bf16.msra.mxu1 %v3351_v43  ;;  %1708 = vmatprep.subr.bf16.mxu0 %v3362_v46  ;;  %v3444_v43 = vld [vmem:[#allocation5 + $0x428] ss:$16 sps:$4 sm:$0xff]   ;;  %v3455_v46 = vld [vmem:[#allocation5 + $0x3cc] ss:$16 sps:$4 sm:$0xff]  }
  0xde   : > { %1790 = vmatprep.subr.bf16.mxu1 %v3359_v45  ;;  %v3452_v45 = vld [vmem:[#allocation5 + $0x40c] ss:$16 sps:$4 sm:$0xff]  }
  0xe0   : > { %1709 = vmatpush2.bf16.msra.mxu0 %v3360_v48  ;;  %v3453_v48 = vld [vmem:[#allocation5 + $0x3c8] ss:$16 sps:$4 sm:$0xff]  }
  0xe1   : > { %1791 = vmatpush2.bf16.msra.mxu1 %v3357_v47  ;;  %1710 = vmatprep.subr.bf16.mxu0 %v3368_v50  ;;  %v3450_v47 = vld [vmem:[#allocation5 + $0x408] ss:$16 sps:$4 sm:$0xff]   ;;  %v3461_v50 = vld [vmem:[#allocation5 + $0x3ac] ss:$16 sps:$4 sm:$0xff]  }
  0xe2   : > { %1792 = vmatprep.subr.bf16.mxu1 %v3365_v49  ;;  %v3458_v49 = vld [vmem:[#allocation5 + $0x5ec] ss:$16 sps:$4 sm:$0xff]  }
  0xe4   : > { %1711 = vmatpush2.bf16.msra.mxu0 %v3366_v53  ;;  %v3459_v53 = vld [vmem:[#allocation5 + $0x3a8] ss:$16 sps:$4 sm:$0xff]  }
  0xe5   : > { %1793 = vmatpush2.bf16.msra.mxu1 %v3363_v52  ;;  %1712 = vmatprep.subr.bf16.mxu0 %v3374_v55  ;;  %v3456_v52 = vld [vmem:[#allocation5 + $0x5e8] ss:$16 sps:$4 sm:$0xff]   ;;  %v3467_v55 = vld [vmem:[#allocation5 + $0x38c] ss:$16 sps:$4 sm:$0xff]  }
  0xe6   : > { %1794 = vmatprep.subr.bf16.mxu1 %v3371_v54  ;;  %v3464_v54 = vld [vmem:[#allocation5 + $0x5cc] ss:$16 sps:$4 sm:$0xff]  }
  0xe8   : > { %1713 = vmatpush2.bf16.msra.mxu0 %v3372_v57  ;;  %v3465_v57 = vld [vmem:[#allocation5 + $0x388] ss:$16 sps:$4 sm:$0xff]  }
  0xe9   : > { %1795 = vmatpush2.bf16.msra.mxu1 %v3369_v56  ;;  %1714 = vmatprep.subr.bf16.mxu0 %v3380_v59  ;;  %v3462_v56 = vld [vmem:[#allocation5 + $0x5c8] ss:$16 sps:$4 sm:$0xff]   ;;  %v3473_v59 = vld [vmem:[#allocation5 + $0x36c] ss:$16 sps:$4 sm:$0xff]  }
  0xea   : > { %1796 = vmatprep.subr.bf16.mxu1 %v3377_v58  ;;  %v3470_v58 = vld [vmem:[#allocation5 + $0x5ac] ss:$16 sps:$4 sm:$0xff]  }
  0xec   : > { %1715 = vmatpush2.bf16.msra.mxu0 %v3378_v61  ;;  %v3471_v61 = vld [vmem:[#allocation5 + $0x368] ss:$16 sps:$4 sm:$0xff]  }
  0xed   : > { %1797 = vmatpush2.bf16.msra.mxu1 %v3375_v60  ;;  %1716 = vmatprep.subr.bf16.mxu0 %v3386_v63  ;;  %v3468_v60 = vld [vmem:[#allocation5 + $0x5a8] ss:$16 sps:$4 sm:$0xff]   ;;  %v3479_v63 = vld [vmem:[#allocation5 + $0x34c] ss:$16 sps:$4 sm:$0xff]  }
  0xee   : > { %1798 = vmatprep.subr.bf16.mxu1 %v3383_v62  ;;  %v3476_v62 = vld [vmem:[#allocation5 + $0x58c] ss:$16 sps:$4 sm:$0xff]  }
  0xf0   : > { %1717 = vmatpush2.bf16.msra.mxu0 %v3384_v1  ;;  %v3477_v1 = vld [vmem:[#allocation5 + $0x348] ss:$16 sps:$4 sm:$0xff]  }
  0xf1   : > { %1799 = vmatpush2.bf16.msra.mxu1 %v3381_v0  ;;  %1718 = vmatprep.subr.bf16.mxu0 %v3392_v3  ;;  %v3474_v0 = vld [vmem:[#allocation5 + $0x588] ss:$16 sps:$4 sm:$0xff]   ;;  %v3485_v3 = vld [vmem:[#allocation5 + $0x32c] ss:$16 sps:$4 sm:$0xff]  }
  0xf2   : > { %1800 = vmatprep.subr.bf16.mxu1 %v3389_v2  ;;  %v3482_v2 = vld [vmem:[#allocation5 + $0x56c] ss:$16 sps:$4 sm:$0xff]  }
  0xf4   : > { %1719 = vmatpush2.bf16.msra.mxu0 %v3390_v7  ;;  %v3483_v7 = vld [vmem:[#allocation5 + $0x328] ss:$16 sps:$4 sm:$0xff]  }
  0xf5   : > { %1801 = vmatpush2.bf16.msra.mxu1 %v3387_v6  ;;  %1817 = vmatprep.subr.bf16.mxu0 %v3401_v9  ;;  %v3480_v6 = vld [vmem:[#allocation5 + $0x568] ss:$16 sps:$4 sm:$0xff]   ;;  %v3491_v9 = vld [vmem:[#allocation5 + $0x30c] ss:$16 sps:$4 sm:$0xff]  }
  0xf6   : > { %1802 = vmatprep.subr.bf16.mxu1 %v3398_v8  ;;  %v3488_v8 = vld [vmem:[#allocation5 + $0x54c] ss:$16 sps:$4 sm:$0xff]  }
  0xf7   : > { %1721 = vmatmul.mubr.bf16.vlgmr.msra.gmra.mxu0 %v4065_v10 }
  0xf8   : > { %1818 = vmatpush1.bf16.msra.mxu0 %v3399_v13  ;;  %1849 = vmatprep.mubr.bf16.mxu0 %v4041_v51  ;;  %v3428_v51 = vld [vmem:[#allocation5 + $0x48c] ss:$16 sps:$4 sm:$0xff]   ;;  %v3489_v13 = vld [vmem:[#allocation5 + $0x308] ss:$16 sps:$4 sm:$0xff]  }
  0xf9   : > { %1803 = vmatpush2.bf16.msra.mxu1 %v3396_v12  ;;  %1819 = vmatprep.subr.bf16.mxu0 %v3407_v16  ;;  %v3486_v12 = vld [vmem:[#allocation5 + $0x548] ss:$16 sps:$4 sm:$0xff]  }
  0xfa   : > { %1804 = vmatprep.subr.bf16.mxu1 %v3404_v15  ;;  %v3494_v15 = vld [vmem:[#allocation5 + $0x52c] ss:$16 sps:$4 sm:$0xff]   ;;  %v3503_v16 = vld [vmem:[#allocation8 + $0x74] ss:$8 sps:$4 sm:$0xff]  }
  0xfc   : > { %1820 = vmatpush1.bf16.msra.mxu0 %v3405_v18  ;;  %v3501_v18 = vld [vmem:[#allocation8 + $0x70] ss:$8 sps:$4 sm:$0xff]  }
  0xfd   : > { %1805 = vmatpush2.bf16.msra.mxu1 %v3402_v17  ;;  %1821 = vmatprep.subr.bf16.mxu0 %v3413_v20  ;;  %v3492_v17 = vld [vmem:[#allocation5 + $0x528] ss:$16 sps:$4 sm:$0xff]  }
  0xfe   : > { %1860 = vmatprep.subr.bf16.mxu1 %v3410_v19  ;;  %v3497_v19 = vld [vmem:[#allocation5 + $0x50c] ss:$16 sps:$4 sm:$0xff]   ;;  %v3506_v20 = vld [vmem:[#allocation8 + $0x64] ss:$8 sps:$4 sm:$0xff]  }
 0x100   : > { %1807 = vmatmul.mubr.bf16.vlgmr.msra.gmra.mxu1 %v4046_v4  ;;  %1822 = vmatpush1.bf16.msra.mxu0 %v3411_v22  ;;  %v3429_v4 = vld [vmem:[#allocation5 + $0x248] ss:$16 sps:$4 sm:$0xff]   ;;  %v3504_v22 = vld [vmem:[#allocation8 + $0x60] ss:$8 sps:$4 sm:$0xff]  }
 0x101   : > { %1861 = vmatpush1.bf16.msra.mxu1 %v3408_v21  ;;  %1823 = vmatprep.subr.bf16.mxu0 %v3419_v24  ;;  %v3495_v21 = vld [vmem:[#allocation5 + $0x508] ss:$16 sps:$4 sm:$0xff]  }
 0x102   : > { %1862 = vmatprep.subr.bf16.mxu1 %v3416_v23  ;;  %1892 = vmatprep.mubr.bf16.mxu1 %v4061_v33  ;;  %v3443_v33 = vld [vmem:[#allocation5 + $0x20c] ss:$16 sps:$4 sm:$0xff]   ;;  %v3509_v24 = vld [vmem:[#allocation8 + $0x54] ss:$8 sps:$4 sm:$0xff]  }
 0x103   : > { %v3500_v23 = vld [vmem:[#allocation5 + $0x60c] ss:$16 sps:$4 sm:$0xff]  }
 0x104   : > { %1824 = vmatpush1.bf16.msra.mxu0 %v3417_v26  ;;  %v3507_v26 = vld [vmem:[#allocation8 + $0x50] ss:$8 sps:$4 sm:$0xff]  }
 0x105   : > { %1863 = vmatpush1.bf16.msra.mxu1 %v3414_v25  ;;  %1825 = vmatprep.subr.bf16.mxu0 %v3425_v28  ;;  %v3498_v25 = vld [vmem:[#allocation5 + $0x608] ss:$16 sps:$4 sm:$0xff]  }
 0x106   : > { %1864 = vmatprep.subr.bf16.mxu1 %v3422_v27  ;;  %v3512_v27 = vld [vmem:[#allocation8 + $0x44] ss:$8 sps:$4 sm:$0xff]   ;;  %v3515_v28 = vld [vmem:[#allocation8 + $0x34] ss:$8 sps:$4 sm:$0xff]  }
 0x108   : > { %1826 = vmatpush1.bf16.msra.mxu0 %v3423_v30  ;;  %v3518_v30 = vld [vmem:[#allocation8 + $0x24] ss:$8 sps:$4 sm:$0xff]  }
 0x109   : > { %1865 = vmatpush1.bf16.msra.mxu1 %v3420_v29  ;;  %1827 = vmatprep.subr.bf16.mxu0 %v3431_v31  ;;  %v3513_v29 = vld [vmem:[#allocation8 + $0x30] ss:$8 sps:$4 sm:$0xff]   ;;  %v3551_v31 = vld [vmem:[#allocation8 + $0x174] ss:$8 sps:$4 sm:$0xff]  }
 0x10a   : > { %1866 = vmatprep.subr.bf16.mxu1 %v3428_v51  ;;  %v3549_v51 = vld [vmem:[#allocation8 + $0x170] ss:$8 sps:$4 sm:$0xff]  }
 0x10c   : > { %1828 = vmatpush1.bf16.msra.mxu0 %v3429_v4  ;;  %v3516_v4 = vld [vmem:[#allocation8 + $0x20] ss:$8 sps:$4 sm:$0xff]  }
 0x10d   : > { %1867 = vmatpush1.bf16.msra.mxu1 %v3426_v32  ;;  %1829 = vmatprep.subr.bf16.mxu0 %v3437_v35  ;;  %v3554_v32 = vld [vmem:[#allocation8 + $0x164] ss:$8 sps:$4 sm:$0xff]   ;;  %v3519_v35 = vld [vmem:[#allocation8 + $0x10] ss:$8 sps:$4 sm:$0xff]  }
 0x10e   : > { %1868 = vmatprep.subr.bf16.mxu1 %v3434_v34  ;;  %v3557_v34 = vld [vmem:[#allocation8 + $0x154] ss:$8 sps:$4 sm:$0xff]  }
 0x110   : > { %1830 = vmatpush1.bf16.msra.mxu0 %v3435_v37  ;;  %v3555_v37 = vld [vmem:[#allocation8 + $0x150] ss:$8 sps:$4 sm:$0xff]  }
 0x111   : > { %1869 = vmatpush1.bf16.msra.mxu1 %v3432_v36  ;;  %1831 = vmatprep.subr.bf16.mxu0 %v3443_v33  ;;  %v3524_v36 = vld [vmem:[#allocation8 + $0x4] ss:$8 sps:$4 sm:$0xff]   ;;  %v3527_v33 = vld [vmem:[#allocation8 + $0xf4] ss:$8 sps:$4 sm:$0xff]  }
 0x112   : > { %1870 = vmatprep.subr.bf16.mxu1 %v3440_v38  ;;  %v3522_v38 = vld [vmem:[#allocation8] ss:$8 sps:$4 sm:$0xff]  }
 0x114   : > { %1832 = vmatpush1.bf16.msra.mxu0 %v3441_v40  ;;  %v3563_v40 = vld [vmem:[#allocation8 + $0x134] ss:$8 sps:$4 sm:$0xff]  }
 0x115   : > { %1871 = vmatpush1.bf16.msra.mxu1 %v3438_v39  ;;  %1833 = vmatprep.subr.bf16.mxu0 %v3449_v42  ;;  %v3558_v39 = vld [vmem:[#allocation8 + $0x140] ss:$8 sps:$4 sm:$0xff]   ;;  %v3530_v42 = vld [vmem:[#allocation8 + $0xe4] ss:$8 sps:$4 sm:$0xff]  }
 0x116   : > { %1872 = vmatprep.subr.bf16.mxu1 %v3446_v41  ;;  %v3525_v41 = vld [vmem:[#allocation8 + $0xf0] ss:$8 sps:$4 sm:$0xff]  }
 0x118   : > { %1834 = vmatpush2.bf16.msra.mxu0 %v3447_v44  ;;  %v3566_v44 = vld [vmem:[#allocation8 + $0x124] ss:$8 sps:$4 sm:$0xff]  }
 0x119   : > { %1873 = vmatpush1.bf16.msra.mxu1 %v3444_v43  ;;  %1835 = vmatprep.subr.bf16.mxu0 %v3455_v46  ;;  %v3561_v43 = vld [vmem:[#allocation8 + $0x130] ss:$8 sps:$4 sm:$0xff]   ;;  %v3533_v46 = vld [vmem:[#allocation8 + $0xd4] ss:$8 sps:$4 sm:$0xff]  }
 0x11a   : > { %1874 = vmatprep.subr.bf16.mxu1 %v3452_v45  ;;  %v3528_v45 = vld [vmem:[#allocation8 + $0xe0] ss:$8 sps:$4 sm:$0xff]  }
 0x11c   : > { %1836 = vmatpush2.bf16.msra.mxu0 %v3453_v48  ;;  %v3569_v48 = vld [vmem:[#allocation8 + $0x114] ss:$8 sps:$4 sm:$0xff]  }
 0x11d   : > { %1875 = vmatpush1.bf16.msra.mxu1 %v3450_v47  ;;  %1837 = vmatprep.subr.bf16.mxu0 %v3461_v50  ;;  %v3564_v47 = vld [vmem:[#allocation8 + $0x120] ss:$8 sps:$4 sm:$0xff]   ;;  %v3536_v50 = vld [vmem:[#allocation8 + $0xc4] ss:$8 sps:$4 sm:$0xff]  }
 0x11e   : > { %1876 = vmatprep.subr.bf16.mxu1 %v3458_v49  ;;  %v3531_v49 = vld [vmem:[#allocation8 + $0xd0] ss:$8 sps:$4 sm:$0xff]  }
 0x120   : > { %1838 = vmatpush2.bf16.msra.mxu0 %v3459_v53  ;;  %v3572_v53 = vld [vmem:[#allocation8 + $0x104] ss:$8 sps:$4 sm:$0xff]  }
 0x121   : > { %1877 = vmatpush2.bf16.msra.mxu1 %v3456_v52  ;;  %1839 = vmatprep.subr.bf16.mxu0 %v3467_v55  ;;  %v3567_v52 = vld [vmem:[#allocation8 + $0x110] ss:$8 sps:$4 sm:$0xff]   ;;  %v3539_v55 = vld [vmem:[#allocation8 + $0xb4] ss:$8 sps:$4 sm:$0xff]  }
 0x122   : > { %1878 = vmatprep.subr.bf16.mxu1 %v3464_v54  ;;  %v3534_v54 = vld [vmem:[#allocation8 + $0xc0] ss:$8 sps:$4 sm:$0xff]  }
 0x124   : > { %1840 = vmatpush2.bf16.msra.mxu0 %v3465_v57  ;;  %v3575_v57 = vld [vmem:[#allocation8 + $0x1f4] ss:$8 sps:$4 sm:$0xff]  }
 0x125   : > { %1879 = vmatpush2.bf16.msra.mxu1 %v3462_v56  ;;  %1841 = vmatprep.subr.bf16.mxu0 %v3473_v59  ;;  %v3570_v56 = vld [vmem:[#allocation8 + $0x100] ss:$8 sps:$4 sm:$0xff]   ;;  %v3542_v59 = vld [vmem:[#allocation8 + $0xa4] ss:$8 sps:$4 sm:$0xff]  }
 0x126   : > { %1880 = vmatprep.subr.bf16.mxu1 %v3470_v58  ;;  %v3537_v58 = vld [vmem:[#allocation8 + $0xb0] ss:$8 sps:$4 sm:$0xff]  }
 0x128   : > { %1842 = vmatpush2.bf16.msra.mxu0 %v3471_v61  ;;  %v3540_v61 = vld [vmem:[#allocation8 + $0xa0] ss:$8 sps:$4 sm:$0xff]  }
 0x129   : > { %1881 = vmatpush2.bf16.msra.mxu1 %v3468_v60  ;;  %1843 = vmatprep.subr.bf16.mxu0 %v3479_v63  ;;  %v3573_v60 = vld [vmem:[#allocation8 + $0x1f0] ss:$8 sps:$4 sm:$0xff]  }
 0x12a   : > { %1882 = vmatprep.subr.bf16.mxu1 %v3476_v62  ;;  %v3545_v62 = vld [vmem:[#allocation8 + $0x94] ss:$8 sps:$4 sm:$0xff]   ;;  %v3543_v63 = vld [vmem:[#allocation8 + $0x90] ss:$8 sps:$4 sm:$0xff]  }
 0x12c   : > { %1844 = vmatpush2.bf16.msra.mxu0 %v3477_v1  ;;  %v3546_v1 = vld [vmem:[#allocation8 + $0x80] ss:$8 sps:$4 sm:$0xff]  }
 0x12d   : > { %1883 = vmatpush2.bf16.msra.mxu1 %v3474_v0  ;;  %1845 = vmatprep.subr.bf16.mxu0 %v3485_v3  ;;  %v3548_v0 = vld [vmem:[#allocation8 + $0x84] ss:$8 sps:$4 sm:$0xff]   ;;  %v3576_v3 = vld [vmem:[#allocation8 + $0x1e0] ss:$8 sps:$4 sm:$0xff]  }
 0x12e   : > { %1884 = vmatprep.subr.bf16.mxu1 %v3482_v2  ;;  %v3578_v2 = vld [vmem:[#allocation8 + $0x1e4] ss:$8 sps:$4 sm:$0xff]  }
 0x130   : > { %1846 = vmatpush2.bf16.msra.mxu0 %v3483_v7  ;;  %v3579_v7 = vld [vmem:[#allocation8 + $0x1d0] ss:$8 sps:$4 sm:$0xff]  }
 0x131   : > { %1885 = vmatpush2.bf16.msra.mxu1 %v3480_v6  ;;  %1847 = vmatprep.subr.bf16.mxu0 %v3491_v9  ;;  %v3581_v6 = vld [vmem:[#allocation8 + $0x1d4] ss:$8 sps:$4 sm:$0xff]   ;;  %v3582_v9 = vld [vmem:[#allocation8 + $0x1c0] ss:$8 sps:$4 sm:$0xff]  }
 0x132   : > { %1886 = vmatprep.subr.bf16.mxu1 %v3488_v8  ;;  %v3584_v8 = vld [vmem:[#allocation8 + $0x1c4] ss:$8 sps:$4 sm:$0xff]  }
 0x134   : > { %1848 = vmatpush2.bf16.msra.mxu0 %v3489_v13  ;;  %v3585_v13 = vld [vmem:[#allocation8 + $0x1b0] ss:$8 sps:$4 sm:$0xff]  }
 0x135   : > { %1887 = vmatpush2.bf16.msra.mxu1 %v3486_v12  ;;  %2354 = vmatprep.subr.bf16.mxu0 %v3503_v16  ;;  %v3587_v12 = vld [vmem:[#allocation8 + $0x1b4] ss:$8 sps:$4 sm:$0xff]   ;;  %v3588_v16 = vld [vmem:[#allocation8 + $0x1a0] ss:$8 sps:$4 sm:$0xff]  }
 0x136   : > { %1888 = vmatprep.subr.bf16.mxu1 %v3494_v15  ;;  %v3590_v15 = vld [vmem:[#allocation8 + $0x1a4] ss:$8 sps:$4 sm:$0xff]  }
 0x137   : > { %1850 = vmatmul.mubr.bf16.vlgmr.msra.gmra.mxu0 %v4049_v5  ;;  %v3510_v5 = vld [vmem:[#allocation8 + $0x40] ss:$8 sps:$4 sm:$0xff]  }
 0x138   : > { %2355 = vmatpush1.bf16.msra.mxu0 %v3501_v18  ;;  %v3591_v18 = vld [vmem:[#allocation8 + $0x190] ss:$8 sps:$4 sm:$0xff]  }
 0x139   : > { %1889 = vmatpush2.bf16.msra.mxu1 %v3492_v17  ;;  %2356 = vmatprep.subr.bf16.mxu0 %v3506_v20  ;;  %v3593_v17 = vld [vmem:[#allocation8 + $0x194] ss:$8 sps:$4 sm:$0xff]   ;;  %v3594_v20 = vld [vmem:[#allocation8 + $0x180] ss:$8 sps:$4 sm:$0xff]  }
 0x13a   : > { %1890 = vmatprep.subr.bf16.mxu1 %v3497_v19  ;;  %v3596_v19 = vld [vmem:[#allocation8 + $0x184] ss:$8 sps:$4 sm:$0xff]  }
 0x13c   : > { %2357 = vmatpush1.bf16.msra.mxu0 %v3504_v22  ;;  %v563_v22 = vlaneseq }
 0x13d   : > { %1891 = vmatpush2.bf16.msra.mxu1 %v3495_v21  ;;  %2358 = vmatprep.subr.bf16.mxu0 %v3509_v24 }
 0x13e   : > { %1917 = vmatprep.subr.bf16.mxu1 %v3500_v23  ;;  %v4076_v24 = vshrl.u32 %v563_v22, 7 }
 0x140   : > { %1893 = vmatmul.mubr.bf16.vlgmr.msra.gmra.mxu1 %v4065_v10  ;;  %2359 = vmatpush1.bf16.msra.mxu0 %v3507_v26  ;;  %v3521_v10 = vld [vmem:[#allocation8 + $0x14] ss:$8 sps:$4 sm:$0xff]  }
 0x141   : > { %1918 = vmatpush1.bf16.msra.mxu1 %v3498_v25  ;;  %1935 = vmatprep.mubr.bf16.mxu1 %v3832_v11  ;;  %v3552_v11 = vld [vmem:[#allocation8 + $0x160] ss:$8 sps:$4 sm:$0xff]  }
 0x142   : > { %2360 = vmatprep.subr.bf16.mxu0 %v3512_v27  ;;  %2397 = vmatprep.subr.bf16.mxu1 %v3551_v31  ;;  %v569_v27 = vsub.s32 1, %v4076_v24 }
 0x144   : > { %2361 = vmatpush1.bf16.msra.mxu0 %v3510_v5  ;;  %v565_v5 = vsub.s32 0, %v4076_v24 }
 0x145   : > { %2362 = vmatprep.subr.bf16.mxu0 %v3515_v28 }
 0x148   : > { %2977 = vmatmul.mubr.msk.bf16.vlgmr.msra.gmra.mxu1 %vm1598_vm0, %v4055_v14  ;;  %2363 = vmatpush1.bf16.msra.mxu0 %v3513_v29  ;;  %v3560_v14 = vld [vmem:[#allocation8 + $0x144] ss:$8 sps:$4 sm:$0xff]   ;;  %v561_v29 = vld [vmem:[#allocation7] sm:$0xf] }
 0x149   : > { %2364 = vmatprep.subr.bf16.mxu0 %v3518_v30  ;;  %2398 = vmatpush1.bf16.msra.mxu1 %v3549_v51  ;;  %v570_v51 = vrot.slane %v561_v29, %v569_v27  ;;  %v566_v31 = vrot.slane %v561_v29, %v565_v5 }
 0x14a   : > { %2399 = vmatprep.subr.bf16.mxu1 %v3554_v32 }
 0x14c   : > { %2365 = vmatpush1.bf16.msra.mxu0 %v3516_v4 }
 0x14d   : > { %2366 = vmatprep.subr.bf16.mxu0 %v3521_v10  ;;  %2400 = vmatpush1.bf16.msra.mxu1 %v3552_v11 }
 0x14e   : > { %2401 = vmatprep.subr.bf16.mxu1 %v3557_v34 }
 0x150   : > { %2367 = vmatpush1.bf16.msra.mxu0 %v3519_v35 }
 0x151   : > { %2368 = vmatprep.subr.bf16.mxu0 %v3524_v36  ;;  %2402 = vmatpush1.bf16.msra.mxu1 %v3555_v37 }
 0x152   : > { %2403 = vmatprep.subr.bf16.mxu1 %v3560_v14 }
 0x154   : > { %2369 = vmatpush1.bf16.msra.mxu0 %v3522_v38 }
 0x155   : > { %2370 = vmatprep.subr.bf16.mxu0 %v3527_v33  ;;  %2404 = vmatpush1.bf16.msra.mxu1 %v3558_v39 }
 0x156   : > { %2405 = vmatprep.subr.bf16.mxu1 %v3563_v40 }
 0x158   : > { %2371 = vmatpush2.bf16.msra.mxu0 %v3525_v41 }
 0x159   : > { %2372 = vmatprep.subr.bf16.mxu0 %v3530_v42  ;;  %2406 = vmatpush1.bf16.msra.mxu1 %v3561_v43 }
 0x15a   : > { %2407 = vmatprep.subr.bf16.mxu1 %v3566_v44 }
 0x15c   : > { %2373 = vmatpush2.bf16.msra.mxu0 %v3528_v45 }
 0x15d   : > { %2374 = vmatprep.subr.bf16.mxu0 %v3533_v46  ;;  %2408 = vmatpush1.bf16.msra.mxu1 %v3564_v47 }
 0x15e   : > { %2409 = vmatprep.subr.bf16.mxu1 %v3569_v48 }
 0x160   : > { %2375 = vmatpush2.bf16.msra.mxu0 %v3531_v49 }
 0x161   : > { %2376 = vmatprep.subr.bf16.mxu0 %v3536_v50  ;;  %2410 = vmatpush1.bf16.msra.mxu1 %v3567_v52 }
 0x162   : > { %2411 = vmatprep.subr.bf16.mxu1 %v3572_v53 }
 0x164   : > { %2377 = vmatpush2.bf16.msra.mxu0 %v3534_v54 }
 0x165   : > { %2378 = vmatprep.subr.bf16.mxu0 %v3539_v55  ;;  %2412 = vmatpush1.bf16.msra.mxu1 %v3570_v56 }
 0x166   : > { %2413 = vmatprep.subr.bf16.mxu1 %v3575_v57 }
 0x168   : > { %2379 = vmatpush2.bf16.msra.mxu0 %v3537_v58 }
 0x169   : > { %2380 = vmatprep.subr.bf16.mxu0 %v3542_v59  ;;  %2414 = vmatpush2.bf16.msra.mxu1 %v3573_v60 }
 0x16a   : > { %2415 = vmatprep.subr.bf16.mxu1 %v3578_v2  ;;  %v577_v2 = vsub.s32 3, %v4076_v24 }
 0x16c   : > { %2381 = vmatpush2.bf16.msra.mxu0 %v3540_v61 }
 0x16d   : > { %2382 = vmatprep.subr.bf16.mxu0 %v3545_v62  ;;  %2416 = vmatpush2.bf16.msra.mxu1 %v3576_v3  ;;  %v573_v3 = vsub.s32 2, %v4076_v24 }
 0x16e   : > { %2417 = vmatprep.subr.bf16.mxu1 %v3581_v6 }
 0x170   : > { %2383 = vmatpush2.bf16.msra.mxu0 %v3543_v63 }
 0x171   : > { %2384 = vmatprep.subr.bf16.mxu0 %v3548_v0  ;;  %2418 = vmatpush2.bf16.msra.mxu1 %v3579_v7 }
 0x172   : > { %2419 = vmatprep.subr.bf16.mxu1 %v3584_v8 }
 0x174   : > { %2385 = vmatpush2.bf16.msra.mxu0 %v3546_v1 }
 0x175   : > { %2420 = vmatpush2.bf16.msra.mxu1 %v3582_v9  ;;  %v578_v9 = vrot.slane %v561_v29, %v577_v2 }
 0x176   : > { %2421 = vmatprep.subr.bf16.mxu1 %v3587_v12  ;;  %v574_v12 = vrot.slane %v561_v29, %v573_v3 }
 0x177   : > { %v1636_v25 = vpop.f32.mrf.mxu0 }
 0x178   : > { %v1679_v21 = vpop.f32.mrf.mxu1  ;;  %v1637_v11 = vadd.f32 %v1636_v25, %v566_v31 }
 0x179   : > { %2422 = vmatpush2.bf16.msra.mxu1 %v3585_v13  ;;  %v1638_v28 = vpop.f32.mrf.mxu0 }
 0x17a   : > { %2423 = vmatprep.subr.bf16.mxu1 %v3590_v15  ;;  %v1681_v23 = vpop.f32.mrf.mxu1  ;;  %v1639_v10 = vadd.f32 %v1638_v28, %v570_v51  ;;  %v1680_v33 = vadd.f32 %v1679_v21, %v1637_v11 }
 0x17b   : > { %v1640_v32 = vpop.f32.mrf.mxu0 }
 0x17c   : > { %v1683_v26 = vpop.f32.mrf.mxu1  ;;  %v1641_v35 = vadd.f32 %v1640_v32, %v566_v31  ;;  %v1682_v14 = vadd.f32 %v1681_v23, %v1639_v10 }
 0x17d   : > { %2424 = vmatpush2.bf16.msra.mxu1 %v3588_v16  ;;  %v1642_v34 = vpop.f32.mrf.mxu0 }
 0x17e   : > { %2425 = vmatprep.subr.bf16.mxu1 %v3593_v17  ;;  %v1685_v30 = vpop.f32.mrf.mxu1  ;;  %v1643_v38 = vadd.f32 %v1642_v34, %v570_v51  ;;  %v1684_v40 = vadd.f32 %v1683_v26, %v1641_v35 }
 0x180   : > { %v1765_v4 = vpop.f32.mrf.mxu1  ;;  %v1686_v45 = vadd.f32 %v1685_v30, %v1643_v38  ;;  %v3599_v38 = vld [vmem:[#allocation10 + $0x70] sm:$0xff]  }
 0x181   : > { %2426 = vmatpush2.bf16.msra.mxu1 %v3591_v18 }
 0x182   : > { %2427 = vmatprep.subr.bf16.mxu1 %v3596_v19  ;;  %v1767_v36 = vpop.f32.mrf.mxu1 }
 0x184   : > { %v1769_v42 = vpop.f32.mrf.mxu1 }
 0x185   : > { %2428 = vmatpush2.bf16.msra.mxu1 %v3594_v20 }
 0x186   : > { %v1771_v52 = vpop.f32.mrf.mxu1 }
 0x1b7   : > { %v1722_v37 = vpop.f32.mrf.mxu0 }
 0x1b8   : > { %v1723_v43 = vadd.f32 %v1722_v37, %v1680_v33  ;;  %v3597_v37 = vld [vmem:[#allocation10 + $0x78] sm:$0xff]  }
 0x1b9   : > { %v1724_v39 = vpop.f32.mrf.mxu0  ;;  %3074 = vmatprep.subr.bf16.mxu0 %v3597_v37 }
 0x1ba   : > { %v1725_v41 = vadd.f32 %v1724_v39, %v1682_v14  ;;  %v1766_v53 = vadd.f32 %v1765_v4, %v1723_v43  ;;  %v3598_v14 = vld [vmem:[#allocation10 + $0x38] sm:$0xff]  }
 0x1bb   : > { %v1726_v44 = vpop.f32.mrf.mxu0 }
 0x1bc   : > { %v1727_v46 = vadd.f32 %v1726_v44, %v1684_v40  ;;  %v1768_v48 = vadd.f32 %v1767_v36, %v1725_v41  ;;  %v1946_v58 = vmax.f32 %v1766_v53, 0.0  ;;  %v3601_v44 = vld [vmem:[#allocation10 + $0x68] sm:$0xff]   ;;  %v3608_v53 = vld [vmem:[#allocation10 + $0x10] sm:$0xff]  }
 0x1bd   : > { %v1728_v47 = vpop.f32.mrf.mxu0 }
 0x1be   : > { %v1770_v49 = vadd.f32 %v1769_v42, %v1727_v46  ;;  %v1729_v50 = vadd.f32 %v1728_v47, %v1686_v45  ;;  %v1947_v56 = vmax.f32 %v1768_v48, 0.0  ;;  %v3600_v42 = vld [vmem:[#allocation10 + $0x30] sm:$0xff]   ;;  %v3602_v46 = vld [vmem:[#allocation10 + $0x28] sm:$0xff]   ;;  %v3603_v47 = vld [vmem:[#allocation10 + $0x60] sm:$0xff]  }
 0x1bf   : > { %v3604_v48 = vld [vmem:[#allocation10 + $0x20] sm:$0xff]  }
 0x1c0   : > { %v1772_v54 = vadd.f32 %v1771_v52, %v1729_v50  ;;  %v1950_v55 = vmax.f32 %v1770_v49, 0.0  ;;  %v1808_v61 = vpop.f32.mrf.mxu1  ;;  %v3605_v49 = vld [vmem:[#allocation10 + $0x58] sm:$0xff]   ;;  %v3607_v52 = vld [vmem:[#allocation10 + $0x50] sm:$0xff]  }
 0x1c1   : > { %v1809_v19 = vadd.f32 %v1808_v61, %v574_v12  ;;  %v3606_v50 = vld [vmem:[#allocation10 + $0x18] sm:$0xff]  }
 0x1c2   : > { %v1951_v57 = vmax.f32 %v1772_v54, 0.0  ;;  %v1954_v60 = vpack.c.bf16 %v1950_v55, %v1946_v58  ;;  %v1810_v62 = vpop.f32.mrf.mxu1  ;;  %v3609_v54 = vld [vmem:[#allocation10 + $0x48] sm:$0xff]  }
 0x1c3   : > { %v1811_v17 = vadd.f32 %v1810_v62, %v578_v9  ;;  %v3610_v55 = vld [vmem:[#allocation10 + $0x8] sm:$0xff]  }
 0x1c4   : > { %v1955_v59 = vpack.c.bf16 %v1951_v57, %v1947_v56  ;;  %v1812_v63 = vpop.f32.mrf.mxu1  ;;  %v3611_v56 = vld [vmem:[#allocation10 + $0x40] sm:$0xff]  }
 0x1c5   : > { %v1813_v18 = vadd.f32 %v1812_v63, %v574_v12  ;;  %v3612_v57 = vld [vmem:[#allocation10] sm:$0xff]  }
 0x1c6   : > { %2386 = vmatprep.mubr.bf16.mxu0 %v1955_v59  ;;  %v1814_v1 = vpop.f32.mrf.mxu1 }
 0x1c7   : > { %2387 = vmatmul.mubr.bf16.vlgmr.msra.gmra.mxu0 %v1954_v60  ;;  %v1815_v22 = vadd.f32 %v1814_v1, %v578_v9  ;;  %v2022_v60 = vld [vmem:[%s4150_s4] sm:$0x3] }
 0x1c8   : > { %3075 = vmatpush3.bf16.msra.mxu0 %v3598_v14  ;;  %v2031_v62 = vrot.slane %v2022_v60, %v569_v27  ;;  %v2027_v63 = vrot.slane %v2022_v60, %v565_v5 }
 0x1c9   : > { %3076 = vmatprep.subr.bf16.mxu0 %v3599_v38 }
 0x1cc   : > { %3077 = vmatpush3.bf16.msra.mxu0 %v3600_v42 }
 0x1cd   : > { %3078 = vmatprep.subr.bf16.mxu0 %v3601_v44 }
 0x1d0   : > { %3079 = vmatpush3.bf16.msra.mxu0 %v3602_v46 }
 0x1d1   : > { %3080 = vmatprep.subr.bf16.mxu0 %v3603_v47 }
 0x1d4   : > { %3081 = vmatpush3.bf16.msra.mxu0 %v3604_v48 }
 0x1d5   : > { %3082 = vmatprep.subr.bf16.mxu0 %v3605_v49 }
 0x1d8   : > { %3083 = vmatpush3.bf16.msra.mxu0 %v3606_v50 }
 0x1d9   : > { %3084 = vmatprep.subr.bf16.mxu0 %v3607_v52 }
 0x1dc   : > { %3085 = vmatpush3.bf16.msra.mxu0 %v3608_v53 }
 0x1dd   : > { %3086 = vmatprep.subr.bf16.mxu0 %v3609_v54 }
 0x1e0   : > { %3087 = vmatpush3.bf16.msra.mxu0 %v3610_v55 }
 0x1e1   : > { %3088 = vmatprep.subr.bf16.mxu0 %v3611_v56 }
 0x1e4   : > { %3089 = vmatpush3.bf16.msra.mxu0 %v3612_v57 }
 0x1f7   : > { %v1851_v0 = vpop.f32.mrf.mxu0 }
 0x1f8   : > { %v1852_v26 = vadd.f32 %v1851_v0, %v1809_v19 }
 0x1f9   : > { %v1853_v6 = vpop.f32.mrf.mxu0 }
 0x1fa   : > { %v1854_v23 = vadd.f32 %v1853_v6, %v1811_v17 }
 0x1fb   : > { %v1855_v13 = vpop.f32.mrf.mxu0 }
 0x1fc   : > { %v1856_v25 = vadd.f32 %v1855_v13, %v1813_v18 }
 0x1fd   : > { %v1857_v20 = vpop.f32.mrf.mxu0 }
 0x1fe   : > { %v1858_v30 = vadd.f32 %v1857_v20, %v1815_v22 }
 0x200   : > { %v1894_v7 = vpop.f32.mrf.mxu1 }
 0x201   : > { %v1895_v32 = vadd.f32 %v1894_v7, %v1852_v26  ;;  %v3042_v26 = vld [vmem:[%s4152_s6] ss:$0 sm:$0xff] }
 0x202   : > { %v1896_v8 = vpop.f32.mrf.mxu1 }
 0x203   : > { %v1897_v51 = vadd.f32 %v1896_v8, %v1854_v23 }
 0x204   : > { %v1898_v15 = vpop.f32.mrf.mxu1 }
 0x205   : > { %v1899_v31 = vadd.f32 %v1898_v15, %v1856_v25 }
 0x206   : > { %v1900_v16 = vpop.f32.mrf.mxu1 }
 0x207   : > { %v1901_v10 = vadd.f32 %v1900_v16, %v1858_v30 }
 0x208   : > { %v1937_v21 = vpop.f32.mrf.mxu1 }
 0x209   : > { %v1938_v34 = vadd.f32 %v1937_v21, %v1895_v32 }
 0x20a   : > { %v1939_v28 = vpop.f32.mrf.mxu1 }
 0x20b   : > { %v1940_v29 = vadd.f32 %v1939_v28, %v1897_v51  ;;  %v1948_v41 = vmax.f32 %v1938_v34, 0.0 }
 0x20c   : > { %v1941_v4 = vpop.f32.mrf.mxu1 }
 0x20d   : > { %v1942_v11 = vadd.f32 %v1941_v4, %v1899_v31  ;;  %v1949_v39 = vmax.f32 %v1940_v29, 0.0 }
 0x20e   : > { %v1943_v35 = vpop.f32.mrf.mxu1 }
 0x20f   : > { %v1944_v36 = vadd.f32 %v1943_v35, %v1901_v10  ;;  %v1952_v33 = vmax.f32 %v1942_v11, 0.0 }
 0x211   : > { %v1953_v40 = vmax.f32 %v1944_v36, 0.0  ;;  %v1956_v45 = vpack.c.bf16 %v1952_v33, %v1948_v41 }
 0x213   : > { %v1957_v43 = vpack.c.bf16 %v1953_v40, %v1949_v39 }
 0x215   : > { %2429 = vmatprep.mubr.bf16.mxu1 %v1957_v43 }
 0x216   : > { %2430 = vmatmul.mubr.bf16.vlgmr.msra.gmra.mxu1 %v1956_v45 }
 0x287   : > { %v2388_v58 = vpop.f32.mrf.mxu0 }
 0x288   : > { %v2389_v7 = vadd.f32 %v2388_v58, %v2027_v63 }
 0x289   : > { %v2390_v59 = vpop.f32.mrf.mxu0 }
 0x28a   : > { %v2391_v3 = vadd.f32 %v2390_v59, %v2031_v62 }
 0x28b   : > { %v2392_v61 = vpop.f32.mrf.mxu0 }
 0x28c   : > { %v2393_v6 = vadd.f32 %v2392_v61, %v2027_v63 }
 0x28d   : > { %v2394_v1 = vpop.f32.mrf.mxu0 }
 0x28e   : > { %v2395_v9 = vadd.f32 %v2394_v1, %v2031_v62 }
 0x2d6   : > { %v2431_v0 = vpop.f32.mrf.mxu1 }
 0x2d7   : > { %v2432_v15 = vadd.f32 %v2431_v0, %v2389_v7 }
 0x2d8   : > { %v2433_v2 = vpop.f32.mrf.mxu1 }
 0x2d9   : > { %v2434_v12 = vadd.f32 %v2433_v2, %v2391_v3  ;;  %v2440_v24 = vmax.f32 %v2432_v15, 0.0 }
 0x2da   : > { %v2435_v8 = vpop.f32.mrf.mxu1 }
 0x2db   : > { %v2436_v13 = vadd.f32 %v2435_v8, %v2393_v6  ;;  %v2441_v27 = vmax.f32 %v2434_v12, 0.0 }
 0x2dc   : > { %v2437_v16 = vpop.f32.mrf.mxu1 }
 0x2dd   : > { %v2438_v17 = vadd.f32 %v2437_v16, %v2395_v9  ;;  %v2442_v18 = vmax.f32 %v2436_v13, 0.0 }
 0x2df   : > { %v2443_v19 = vmax.f32 %v2438_v17, 0.0  ;;  %v2444_v20 = vpack.c.bf16 %v2442_v18, %v2440_v24 }
 0x2e1   : > { %v2445_v5 = vpack.c.bf16 %v2443_v19, %v2441_v27 }
 0x2e3   : > { %2613 = vmatprep.mubr.bf16.mxu0 %v2445_v5 }
 0x2e4   : > { %2614 = vmatmul.mubr.bf16.vlgmr.msra.gmra.mxu0 %v2444_v20 }
 0x3a4   : > { %v3090_v21 = vpop.f32.mrf.mxu0 }
 0x3a6   : > { %v3091_v22 = vpop.f32.mrf.mxu0 }
 0x3a7   : > { %v3092_v25 = vadd.f32 %v3091_v22, %v3090_v21 }
 0x3a8   : > { %v3093_v23 = vpop.f32.mrf.mxu0 }
 0x3a9   : > { %v2616_v51 = vadd.f32 %v3092_v25, %v3042_v26 }
 0x3aa   : > { %v3094_v28 = vpop.f32.mrf.mxu0 }
 0x3ab   : > { %v3095_v30 = vadd.f32 %v3094_v28, %v3093_v23 }
 0x3ad   : > { %v2619_v31 = vadd.f32 %v3095_v30, %v3042_v26 }
 0x3af   : > { %v3072_v32 = vpack.c.bf16 %v2619_v31, %v2616_v51 }
 0x3b1   : > { %3073 = vst [vmem:[%s353_s16] sm:$0xff] %v3072_v32  }
 0x3b2   : > { %3758 = shalt.err (!%p3755_p5)
}
 0x3b3   : > { %s3759_s9 = scalar_lea.hbm %s4101_s29, 128  ;;  %s3763_s21 = scalar_lea.hbm %s4153_s7, 256 }
 0x3b4   : > { %p3760_p0 = scmp.ne.s32.totalorder %s4101_s29, %s3759_s9  ;;  %p3764_p10 = scmp.lt.s32.totalorder %s4101_s29, %s4153_s7 }
 0x3b5   : > { %p3765_p1 = scmp.lt.s32.totalorder %s3763_s21, %s3759_s9 }
 0x3b6   : > { %p3761_p7 = pnand %p3760_p0, %p4173_p8 }
 0x3b7   : > { %p3766_p2 = por %p3765_p1, %p3764_p10 }
 0x3b8   : > { %p3762_p11 = pneg %p3761_p7 }
 0x3ba   : > { %p3767_p4 = pnand %p3766_p2, %p3762_p11 }
 0x3bc   : > { %3770 = shalt.err (!%p3767_p4)
}
 0x3bd   : > { %s3834_s10 = smov 64   ;;  %s3835_s1 = smov 4  }
 0x3be   : > { %3117 = dma.vmem_to_hbm [thread:$0]  (%p4173_p8), %s4103_s20, 128, %s4101_s29, %s2633_s15, %s3834_s10, %s3834_s10, %s3835_s1  }
 0x3bf PF: > { %s2661_s18 = sand.u32 1, %s3805_s24   ;;  %p4174_p12 = scmp.ne.s32.totalorder %s4160_s8, 0 }
 0x3c0   : > { %p4175_p6 = scmp.ge.s32.totalorder %s3817_s27, 2  ;;  %s2662_s28 = scalar_lea.sflag [#allocation4], %s2661_s18 }
 0x3c2   : > { %p3137_p3 = pnand %p4175_p6, %p4174_p12 }
 0x3c4   : > { %p3138_p9 = pneg %p3137_p3 }
 0x3c6   : > { %3800 = dma.done.wait (%p3138_p9), %s2662_s28, 128  }
 0x3c7   : > { %3802 = vsyncadd (%p3138_p9), %s2662_s28, 4294967168  ;;  %p22_p13 = scmp.ge.s32.totalorder %s3964_s23, 4   ;;  %s4176_s24 = smov %s3809_s25 }
 0x3c8   : > { %s4177_s25 = smov %s3813_s26  ;;  %s4178_s26 = smov %s3973_s11 }
 0x3c9   : > { %s4179_s27 = smov %s3964_s23  ;;  %24 = sbr.rel (!%p22_p13) target bundleno = 9 (0x9), region = 109 }
 0x3ce   :  { %2667 = vsyncpa [#allocation3], 1 }
 0x3cf   :  { %2669 = vsyncpa [#allocation3 + $0x1], 1 }
 0x3d0   :  { %2670 = vsyncpa [#allocation6], 1 }
 0x3d1   :  { %2671 = vsyncpa [#allocation9], 1 }
 0x3d2   :  { %2672 = vsyncpa [#allocation4], 1 }
 0x3d3   :  { %2674 = vsyncpa [#allocation4 + $0x1], 1 }

</bundles_post_ra>
